<compile_context>
chip_gen: v7x
topology: tpu7x:2x2x1
jax: 0.10.0
libtpu: 0.0.40
codegen_flags: <defaults>
</compile_context>

<pallas_src>
import functools
import math

import numpy as np
import jax
import jax.numpy as jnp
from jax.experimental import pallas as pl
from jax.experimental.pallas import tpu as pltpu

LN_EPS = 1e-5          # torch.nn.LayerNorm default eps
NORM_EPS = 1e-12       # torch.nn.functional.normalize default eps


# --------------------------------------------------------------------------------------
# Kernel A: fused LayerNorm1 + qkv projection
# --------------------------------------------------------------------------------------

def _ln_qkv_kernel(x_ref, gb_ref, w_ref, wb_ref, o_ref):
    """o = LayerNorm(x) @ W_qkv + b_qkv."""
    x = x_ref[...]                                             # (tm, C)
    mu = jnp.mean(x, axis=-1, keepdims=True)
    var = jnp.mean((x - mu) ** 2, axis=-1, keepdims=True)
    xn = (x - mu) * jax.lax.rsqrt(var + LN_EPS)
    gb = gb_ref[...]                                           # (2, C) = [gamma; beta]
    xn = xn * gb[0:1, :] + gb[1:2, :]
    o_ref[...] = (jnp.dot(xn, w_ref[...], preferred_element_type=jnp.float32)
                  + wb_ref[...])


def _row_tile(M):
    # >=2 grid steps when possible (keeps both v7x TensorCores busy); tile rows stay a
    # multiple of 8 (sublane tile) and divide M exactly.
    for cand in (256, 128, 64, 32, 16, 8):
        if cand <= M // 2 and M % cand == 0:
            return cand
    return M


def ln_qkv(x, gb1, w, b):
    M, C = x.shape
    K = w.shape[1]
    tm = _row_tile(M)
    row = lambda i: (i, 0)
    const = lambda i: (0, 0)
    return pl.pallas_call(
        _ln_qkv_kernel,
        out_shape=jax.ShapeDtypeStruct((M, K), jnp.float32),
        grid=(M // tm,),
        in_specs=[
            pl.BlockSpec((tm, C), row),
            pl.BlockSpec((2, C), const),
            pl.BlockSpec((C, K), const),
            pl.BlockSpec((1, K), const),
        ],
        out_specs=pl.BlockSpec((tm, K), row),
        compiler_params=pltpu.CompilerParams(dimension_semantics=("parallel",)),
    )(x, gb1, w, b)


# --------------------------------------------------------------------------------------
# Kernel B: channel attention (all heads, token-major) + residual1 + LN2 + MLP + residual2
# --------------------------------------------------------------------------------------

def _attn_mlp_kernel(xs_ref, qkv_ref, sb_ref, vec_ref, w1_ref, b1_ref, w2_ref, o_ref):
    qkv = qkv_ref[...]                       # (3, 1, N, C): scrambled q/k/v, token-major
    q = qkv[0, 0]                            # (N, C)
    k = qkv[1, 0]
    v = qkv[2, 0]

    # F.normalize(..., dim=-1) in channel-major space == per-channel L2 norm over the N
    # tokens here (q/k kept token-major; contract over the token axis below).
    qn = q * jax.lax.rsqrt(jnp.maximum(jnp.sum(q * q, axis=0, keepdims=True),
                                       NORM_EPS * NORM_EPS))
    kn = k * jax.lax.rsqrt(jnp.maximum(jnp.sum(k * k, axis=0, keepdims=True),
                                       NORM_EPS * NORM_EPS))
    # (C, C) scores: contract over tokens; per-head softmax == block-diag masked softmax.
    s = jax.lax.dot_general(qn, kn, (((0,), (0,)), ((), ())),
                            preferred_element_type=jnp.float32)           # (C, C)
    sb = sb_ref[...]                                                      # (2, C, C)
    s = s * sb[0] + sb[1]               # per-head temperature scale + block-diag -1e30
    s = s - jnp.max(s, axis=-1, keepdims=True)
    e = jnp.exp(s)
    probs = e * pl.reciprocal(jnp.sum(e, axis=-1, keepdims=True), approx=True)
    # out[n, i] = sum_j probs[i, j] * v[n, j]   (probs is block-diagonal)
    attn = jax.lax.dot_general(v, probs, (((1,), (1,)), ((), ())),
                               preferred_element_type=jnp.float32)        # (N, C)

    # residual 1 + LayerNorm2 + MLP + residual 2
    vec = vec_ref[...]                                                    # (3, C)
    z = xs_ref[...] + attn
    mu = jnp.mean(z, axis=-1, keepdims=True)
    var = jnp.mean((z - mu) ** 2, axis=-1, keepdims=True)
    zn = (z - mu) * jax.lax.rsqrt(var + LN_EPS)
    zn = zn * vec[0:1, :] + vec[1:2, :]
    h = jnp.dot(zn, w1_ref[...], preferred_element_type=jnp.float32) + b1_ref[...]
    h = 0.5 * h * (1.0 + jax.lax.erf(h * (1.0 / math.sqrt(2.0))))         # exact GELU
    y = jnp.dot(h, w2_ref[...], preferred_element_type=jnp.float32) + vec[2:3, :]
    o_ref[...] = z + y


def attn_mlp(x_sh, qkv_sc, sb, vec2, w1, b1, w2):
    B, N, C = x_sh.shape
    Hd = w1.shape[1]
    bnc = pl.BlockSpec((None, N, C), lambda b: (b, 0, 0))

    def cst(shape):
        zeros = tuple(0 for _ in shape)
        return pl.BlockSpec(shape, lambda b, _z=zeros: _z)

    return pl.pallas_call(
        _attn_mlp_kernel,
        out_shape=jax.ShapeDtypeStruct((B, N, C), jnp.float32),
        grid=(B,),
        in_specs=[
            bnc,                                              # x_sh (shifted shortcut)
            pl.BlockSpec((3, 1, N, C), lambda b: (0, b, 0, 0)),  # scrambled q/k/v slabs
            cst((2, C, C)),                                   # [temp scale; -1e30 mask]
            cst((3, C)),                                      # [g2; b2; b_fc2]
            cst((C, Hd)),                                     # fc1 weight
            cst((1, Hd)),                                     # fc1 bias
            cst((Hd, C)),                                     # fc2 weight
        ],
        out_specs=bnc,
        input_output_aliases={0: 0},                          # write over the shifted input
        compiler_params=pltpu.CompilerParams(dimension_semantics=("parallel",)),
    )(x_sh, qkv_sc, sb, vec2, w1, b1, w2)


# --------------------------------------------------------------------------------------
# Derived, init-time constants (computed once, outside the hot path)
# --------------------------------------------------------------------------------------

def with_derived(p, *, num_heads, chan_heads):
    C = p["w_qkv"].shape[0]
    D = C // num_heads
    blk = np.kron(np.eye(chan_heads, dtype=np.float32),
                  np.ones((D, D), dtype=np.float32))                    # (C, C) in-block=1
    temp_c = jnp.repeat(p["temperature"].reshape(chan_heads), D)        # (C,)
    scale = jnp.asarray(blk) * temp_c[:, None]                          # temp in-block, 0 off
    bias = jnp.asarray((1.0 - blk) * np.float32(-1e30))                 # -1e30 off-block
    q = dict(p)
    q["attn_sb"] = jnp.stack([scale, bias]).astype(jnp.float32)         # (2, C, C)
    q["gb1"] = jnp.concatenate([p["g1"], p["b1"]], axis=0)              # (2, C)
    q["vec2"] = jnp.concatenate([p["g2"], p["b2"], p["b_fc2"]], axis=0)  # (3, C)
    return q


# --------------------------------------------------------------------------------------
# Full block forward (2 Pallas kernels + minimal XLA glue: roll, one transpose, roll)
# --------------------------------------------------------------------------------------

def swin_block_forward(x, p, *, H, W, window_size, shift_size, num_heads, chan_heads):
    B, L, C = x.shape
    assert L == H * W
    assert H % window_size == 0 and W % window_size == 0
    assert num_heads == chan_heads, "only shape-consistent config of the source module"
    nh = num_heads
    D = C // nh
    N = H * W

    if "attn_sb" not in p:
        p = with_derived(p, num_heads=num_heads, chan_heads=chan_heads)

    # Cyclic shift.  norm1, residuals and the MLP are per-token so they commute with the
    # shift: shift once here, un-shift once at the very end.  The rolls cannot be elided:
    # the raw qkv re-interpretation below mixes tokens/batches index-dependently.
    x4 = x.reshape(B, H, W, C)
    if shift_size > 0:
        x4 = jnp.roll(x4, shift=(-shift_size, -shift_size), axis=(1, 2))
    x_sh = x4.reshape(B, N, C)

    # Kernel A: fused LayerNorm1 + qkv projection over all B*N tokens.
    qkv = ln_qkv(x_sh.reshape(B * N, C), p["gb1"], p["w_qkv"], p["b_qkv"])

    # Verbatim reproduction of the module's raw head/qkv re-interpretation:
    #   (B,N,3,nh,D) --permute(3,0,1,2,4)--> (nh,B,N,3,D) --raw reshape--> (3,B,N,ch,D)
    # q/k/v are then token-major slabs of this single buffer (no further transposes).
    # TODO(synk): this reinterpretation mixes tokens and batches at D-chunk granularity,
    #             so it has no weight-folding / rectangular-BlockSpec equivalent; it stays
    #             as a single XLA transpose.
    qkv_sc = (qkv.reshape(B, N, 3, nh, D)
                 .transpose(3, 0, 1, 2, 4)
                 .reshape(3, B, N, C))

    # Kernel B: channel attention + residual + norm2 + MLP + residual (in shifted token
    # order; the module's window_partition/window_reverse pair cancels exactly -> elided).
    out_sh = attn_mlp(x_sh, qkv_sc, p["attn_sb"], p["vec2"],
                      p["w_fc1"], p["b_fc1"], p["w_fc2"])            # (B, N, C)

    out4 = out_sh.reshape(B, H, W, C)
    if shift_size > 0:
        out4 = jnp.roll(out4, shift=(shift_size, shift_size), axis=(1, 2))
    return out4.reshape(B, L, C)


# --------------------------------------------------------------------------------------
# Pure-JAX reference (mirrors the PyTorch forward op-for-op, incl. window glue)
# --------------------------------------------------------------------------------------

def reference_forward(x, p, *, H, W, window_size, shift_size, num_heads, chan_heads):
    B, L, C = x.shape
    nh, ch = num_heads, chan_heads
    D = C // nh
    ws = window_size
    N = H * W
    hi = jax.lax.Precision.HIGHEST

    def layernorm(t, g, b):
        mu = jnp.mean(t, -1, keepdims=True)
        var = jnp.mean((t - mu) ** 2, -1, keepdims=True)
        return (t - mu) / jnp.sqrt(var + LN_EPS) * g[0] + b[0]

    shortcut = x
    xn = layernorm(x, p["g1"], p["b1"])
    x4 = xn.reshape(B, H, W, C)
    if shift_size > 0:
        x4 = jnp.roll(x4, (-shift_size, -shift_size), axis=(1, 2))

    xt = x4.reshape(B, N, C)
    qkv = jnp.dot(xt, p["w_qkv"], precision=hi) + p["b_qkv"][0]
    qkv = qkv.reshape(B, N, 3, nh, D).transpose(3, 0, 1, 2, 4)
    qkv_ch = qkv.reshape(3, B, N, ch, D)
    q = qkv_ch[0].transpose(0, 2, 3, 1)
    k = qkv_ch[1].transpose(0, 2, 3, 1)
    v = qkv_ch[2].transpose(0, 2, 3, 1)
    q = q / jnp.maximum(jnp.linalg.norm(q, axis=-1, keepdims=True), NORM_EPS)
    k = k / jnp.maximum(jnp.linalg.norm(k, axis=-1, keepdims=True), NORM_EPS)
    attn = jnp.einsum("bhdn,bhen->bhde", q, k, precision=hi) * p["temperature"]
    attn = jax.nn.softmax(attn, axis=-1)
    x2 = jnp.einsum("bhde,bhen->bhdn", attn, v, precision=hi)
    x2 = x2.transpose(0, 3, 1, 2)
    x2 = x2.reshape(B, H // ws, ws, W // ws, ws, ch, D)
    x2 = x2.transpose(0, 1, 3, 2, 4, 5, 6).reshape(-1, ws * ws, ch * D)

    aw = x2.reshape(-1, ws, ws, C)
    xr = aw.reshape(B, H // ws, W // ws, ws, ws, C)
    xr = xr.transpose(0, 1, 3, 2, 4, 5).reshape(B, H, W, C)
    if shift_size > 0:
        xr = jnp.roll(xr, (shift_size, shift_size), axis=(1, 2))

    x1 = shortcut + xr.reshape(B, L, C)
    xn2 = layernorm(x1, p["g2"], p["b2"])
    h = jnp.dot(xn2, p["w_fc1"], precision=hi) + p["b_fc1"][0]
    h = 0.5 * h * (1.0 + jax.lax.erf(h / math.sqrt(2.0)))      # exact GELU
    y = jnp.dot(h, p["w_fc2"], precision=hi) + p["b_fc2"][0]
    return x1 + y


# --------------------------------------------------------------------------------------
# Deterministic synthetic parameters
# --------------------------------------------------------------------------------------

def init_params(key, C, chan_heads, hidden):
    ks = jax.random.split(key, 11)
    f32 = jnp.float32
    return {
        "g1": 1.0 + 0.1 * jax.random.normal(ks[0], (1, C), f32),
        "b1": 0.1 * jax.random.normal(ks[1], (1, C), f32),
        "w_qkv": 0.1 * jax.random.normal(ks[2], (C, 3 * C), f32),
        "b_qkv": 0.1 * jax.random.normal(ks[3], (1, 3 * C), f32),
        "temperature": 0.5 + jax.random.uniform(ks[4], (chan_heads, 1, 1), f32),
        "g2": 1.0 + 0.1 * jax.random.normal(ks[5], (1, C), f32),
        "b2": 0.1 * jax.random.normal(ks[6], (1, C), f32),
        "w_fc1": 0.1 * jax.random.normal(ks[7], (C, hidden), f32),
        "b_fc1": 0.1 * jax.random.normal(ks[8], (1, hidden), f32),
        "w_fc2": 0.1 * jax.random.normal(ks[9], (hidden, C), f32),
        "b_fc2": 0.1 * jax.random.normal(ks[10], (1, C), f32),
    }


if __name__ == "__main__":
    # dim=32, input_resolution=(8, 8), num_heads=chan_heads=4 (head_dim=8),
    # window_size=4, shift_size=2, mlp_ratio=4.
    B, H, W = 2, 8, 8
    C = 32
    num_heads = chan_heads = 4
    window_size, shift_size = 4, 2
    hidden = int(C * 4.0)
    L = H * W

    key = jax.random.PRNGKey(0)
    kx, kp = jax.random.split(key)
    x = jax.random.normal(kx, (B, L, C), jnp.float32)
    params = init_params(kp, C, chan_heads, hidden)
    params = with_derived(params, num_heads=num_heads, chan_heads=chan_heads)

    fwd = jax.jit(functools.partial(
        swin_block_forward, H=H, W=W, window_size=window_size,
        shift_size=shift_size, num_heads=num_heads, chan_heads=chan_heads))
    out = jax.block_until_ready(fwd(x, params))

    ref = reference_forward(x, params, H=H, W=W, window_size=window_size,
                            shift_size=shift_size, num_heads=num_heads,
                            chan_heads=chan_heads)
    np.testing.assert_allclose(np.asarray(out), np.asarray(ref), rtol=2e-3, atol=2e-3)

    print("KERNEL_OK")
</pallas_src>

<mosaic_0001>
module attributes {stable_mosaic.version = 11 : i64} {
  func.func @_ln_qkv_kernel(%arg0: i32, %arg1: memref<64x32xf32, #tpu.memory_space<vmem>>, %arg2: memref<2x32xf32, #tpu.memory_space<vmem>>, %arg3: memref<32x96xf32, #tpu.memory_space<vmem>>, %arg4: memref<1x96xf32, #tpu.memory_space<vmem>>, %arg5: memref<64x96xf32, #tpu.memory_space<vmem>>) attributes {dimension_semantics = [#tpu.dimension_semantics<parallel>], iteration_bounds = array<i64: 2>, scalar_prefetch = 0 : i64, scratch_operands = 0 : i64, tpu.core_type = #tpu.core_type<tc>, window_params = [{transform_indices = @transform_0, window_bounds = array<i64: 64, 32>}, {pipeline_mode = #tpu.pipeline_mode<synchronous>, transform_indices = @transform_1, window_bounds = array<i64: 2, 32>}, {pipeline_mode = #tpu.pipeline_mode<synchronous>, transform_indices = @transform_2, window_bounds = array<i64: 32, 96>}, {pipeline_mode = #tpu.pipeline_mode<synchronous>, transform_indices = @transform_3, window_bounds = array<i64: 1, 96>}, {transform_indices = @transform_4, window_bounds = array<i64: 64, 96>}]} {
    %c0 = arith.constant 0 : index
    %c0_0 = arith.constant 0 : index
    %0 = vector.load %arg1[%c0, %c0_0] : memref<64x32xf32, #tpu.memory_space<vmem>>, vector<64x32xf32>
    %cst = arith.constant dense<0.000000e+00> : vector<64xf32>
    %1 = vector.multi_reduction <add>, %0, %cst [1] : vector<64x32xf32> to vector<64xf32>
    %2 = vector.shape_cast %1 : vector<64xf32> to vector<64x1xf32>
    %cst_1 = arith.constant 3.200000e+01 : f32
    %3 = vector.broadcast %cst_1 : f32 to vector<64x1xf32>
    %4 = arith.divf %2, %3 : vector<64x1xf32>
    %5 = vector.broadcast %4 : vector<64x1xf32> to vector<64x32xf32>
    %6 = arith.subf %0, %5 : vector<64x32xf32>
    %7 = arith.mulf %6, %6 : vector<64x32xf32>
    %cst_2 = arith.constant dense<0.000000e+00> : vector<64xf32>
    %8 = vector.multi_reduction <add>, %7, %cst_2 [1] : vector<64x32xf32> to vector<64xf32>
    %9 = vector.shape_cast %8 : vector<64xf32> to vector<64x1xf32>
    %cst_3 = arith.constant 3.200000e+01 : f32
    %10 = vector.broadcast %cst_3 : f32 to vector<64x1xf32>
    %11 = arith.divf %9, %10 : vector<64x1xf32>
    %12 = vector.broadcast %4 : vector<64x1xf32> to vector<64x32xf32>
    %13 = arith.subf %0, %12 : vector<64x32xf32>
    %cst_4 = arith.constant 9.99999974E-6 : f32
    %14 = vector.broadcast %cst_4 : f32 to vector<64x1xf32>
    %15 = arith.addf %11, %14 : vector<64x1xf32>
    %16 = math.rsqrt %15 : vector<64x1xf32>
    %17 = vector.broadcast %16 : vector<64x1xf32> to vector<64x32xf32>
    %18 = arith.mulf %13, %17 : vector<64x32xf32>
    %c0_5 = arith.constant 0 : index
    %c0_6 = arith.constant 0 : index
    %19 = vector.load %arg2[%c0_5, %c0_6] : memref<2x32xf32, #tpu.memory_space<vmem>>, vector<2x32xf32>
    %20 = vector.extract_strided_slice %19 {offsets = [0, 0], sizes = [1, 32], strides = [1, 1]} : vector<2x32xf32> to vector<1x32xf32>
    %21 = vector.broadcast %20 : vector<1x32xf32> to vector<64x32xf32>
    %22 = arith.mulf %18, %21 : vector<64x32xf32>
    %23 = vector.extract_strided_slice %19 {offsets = [1, 0], sizes = [1, 32], strides = [1, 1]} : vector<2x32xf32> to vector<1x32xf32>
    %24 = vector.broadcast %23 : vector<1x32xf32> to vector<64x32xf32>
    %25 = arith.addf %22, %24 : vector<64x32xf32>
    %c0_7 = arith.constant 0 : index
    %c0_8 = arith.constant 0 : index
    %26 = vector.load %arg3[%c0_7, %c0_8] : memref<32x96xf32, #tpu.memory_space<vmem>>, vector<32x96xf32>
    %cst_9 = arith.constant dense<0.000000e+00> : vector<64x96xf32>
    %27 = tpu.matmul %25, %26, %cst_9 {dimension_numbers = #tpu.dot_dimension_numbers<[1], [0], [0], [1], [0, 0, 1, 1], [], []>} : vector<64x32xf32>, vector<32x96xf32>, vector<64x96xf32> -> vector<64x96xf32>
    %c0_10 = arith.constant 0 : index
    %c0_11 = arith.constant 0 : index
    %28 = vector.load %arg4[%c0_10, %c0_11] : memref<1x96xf32, #tpu.memory_space<vmem>>, vector<1x96xf32>
    %29 = vector.broadcast %28 : vector<1x96xf32> to vector<64x96xf32>
    %30 = arith.addf %27, %29 : vector<64x96xf32>
    %c0_12 = arith.constant 0 : index
    %c0_13 = arith.constant 0 : index
    %31 = vector.load %arg5[%c0_12, %c0_13] : memref<64x96xf32, #tpu.memory_space<vmem>>, vector<64x96xf32>
    tpu.vector_store %arg5[%c0_12, %c0_13], %30 {strides = array<i32>} : memref<64x96xf32, #tpu.memory_space<vmem>>, vector<64x96xf32>,
    return
  }
  func.func @transform_0(%arg0: i32) -> (i32, i32) {
    %c0_i32 = arith.constant 0 : i32
    %c0_i32_0 = arith.constant 0 : i32
    return %arg0, %c0_i32 : i32, i32
  }
  func.func @transform_1(%arg0: i32) -> (i32, i32) {
    %c0_i32 = arith.constant 0 : i32
    %c0_i32_0 = arith.constant 0 : i32
    %c0_i32_1 = arith.constant 0 : i32
    return %c0_i32, %c0_i32_0 : i32, i32
  }
  func.func @transform_2(%arg0: i32) -> (i32, i32) {
    %c0_i32 = arith.constant 0 : i32
    %c0_i32_0 = arith.constant 0 : i32
    %c0_i32_1 = arith.constant 0 : i32
    return %c0_i32, %c0_i32_0 : i32, i32
  }
  func.func @transform_3(%arg0: i32) -> (i32, i32) {
    %c0_i32 = arith.constant 0 : i32
    %c0_i32_0 = arith.constant 0 : i32
    %c0_i32_1 = arith.constant 0 : i32
    return %c0_i32, %c0_i32_0 : i32, i32
  }
  func.func @transform_4(%arg0: i32) -> (i32, i32) {
    %c0_i32 = arith.constant 0 : i32
    %c0_i32_0 = arith.constant 0 : i32
    return %arg0, %c0_i32 : i32, i32
  }
}

module attributes {stable_mosaic.version = 11 : i64} {
  func.func @_attn_mlp_kernel(%arg0: i32, %arg1: memref<1x64x32xf32, #tpu.memory_space<vmem>>, %arg2: memref<3x1x64x32xf32, #tpu.memory_space<vmem>>, %arg3: memref<2x32x32xf32, #tpu.memory_space<vmem>>, %arg4: memref<3x32xf32, #tpu.memory_space<vmem>>, %arg5: memref<32x128xf32, #tpu.memory_space<vmem>>, %arg6: memref<1x128xf32, #tpu.memory_space<vmem>>, %arg7: memref<128x32xf32, #tpu.memory_space<vmem>>, %arg8: memref<1x64x32xf32, #tpu.memory_space<vmem>>) attributes {dimension_semantics = [#tpu.dimension_semantics<parallel>], iteration_bounds = array<i64: 2>, scalar_prefetch = 0 : i64, scratch_operands = 0 : i64, tpu.core_type = #tpu.core_type<tc>, window_params = [{transform_indices = @transform_0, window_bounds = array<i64: 1, 64, 32>}, {transform_indices = @transform_1, window_bounds = array<i64: 3, 1, 64, 32>}, {pipeline_mode = #tpu.pipeline_mode<synchronous>, transform_indices = @transform_2, window_bounds = array<i64: 2, 32, 32>}, {pipeline_mode = #tpu.pipeline_mode<synchronous>, transform_indices = @transform_3, window_bounds = array<i64: 3, 32>}, {pipeline_mode = #tpu.pipeline_mode<synchronous>, transform_indices = @transform_4, window_bounds = array<i64: 32, 128>}, {pipeline_mode = #tpu.pipeline_mode<synchronous>, transform_indices = @transform_5, window_bounds = array<i64: 1, 128>}, {pipeline_mode = #tpu.pipeline_mode<synchronous>, transform_indices = @transform_6, window_bounds = array<i64: 128, 32>}, {transform_indices = @transform_7, window_bounds = array<i64: 1, 64, 32>}]} {
    %c0 = arith.constant 0 : index
    %c0_0 = arith.constant 0 : index
    %c0_1 = arith.constant 0 : index
    %c0_2 = arith.constant 0 : index
    %0 = vector.load %arg2[%c0, %c0_0, %c0_1, %c0_2] : memref<3x1x64x32xf32, #tpu.memory_space<vmem>>, vector<3x1x64x32xf32>
    %1 = vector.extract_strided_slice %0 {offsets = [0, 0, 0, 0], sizes = [1, 1, 64, 32], strides = [1, 1, 1, 1]} : vector<3x1x64x32xf32> to vector<1x1x64x32xf32>
    %2 = vector.shape_cast %1 : vector<1x1x64x32xf32> to vector<64x32xf32>
    %3 = vector.extract_strided_slice %0 {offsets = [1, 0, 0, 0], sizes = [1, 1, 64, 32], strides = [1, 1, 1, 1]} : vector<3x1x64x32xf32> to vector<1x1x64x32xf32>
    %4 = vector.shape_cast %3 : vector<1x1x64x32xf32> to vector<64x32xf32>
    %5 = vector.extract_strided_slice %0 {offsets = [2, 0, 0, 0], sizes = [1, 1, 64, 32], strides = [1, 1, 1, 1]} : vector<3x1x64x32xf32> to vector<1x1x64x32xf32>
    %6 = vector.shape_cast %5 : vector<1x1x64x32xf32> to vector<64x32xf32>
    %7 = arith.mulf %2, %2 : vector<64x32xf32>
    %cst = arith.constant dense<0.000000e+00> : vector<32xf32>
    %8 = vector.multi_reduction <add>, %7, %cst [0] : vector<64x32xf32> to vector<32xf32>
    %9 = vector.shape_cast %8 : vector<32xf32> to vector<1x32xf32>
    %cst_3 = arith.constant 1.000000e-24 : f32
    %10 = vector.broadcast %cst_3 : f32 to vector<1x32xf32>
    %11 = arith.maximumf %9, %10 : vector<1x32xf32>
    %12 = math.rsqrt %11 : vector<1x32xf32>
    %13 = vector.broadcast %12 : vector<1x32xf32> to vector<64x32xf32>
    %14 = arith.mulf %2, %13 : vector<64x32xf32>
    %15 = arith.mulf %4, %4 : vector<64x32xf32>
    %cst_4 = arith.constant dense<0.000000e+00> : vector<32xf32>
    %16 = vector.multi_reduction <add>, %15, %cst_4 [0] : vector<64x32xf32> to vector<32xf32>
    %17 = vector.shape_cast %16 : vector<32xf32> to vector<1x32xf32>
    %cst_5 = arith.constant 1.000000e-24 : f32
    %18 = vector.broadcast %cst_5 : f32 to vector<1x32xf32>
    %19 = arith.maximumf %17, %18 : vector<1x32xf32>
    %20 = math.rsqrt %19 : vector<1x32xf32>
    %21 = vector.broadcast %20 : vector<1x32xf32> to vector<64x32xf32>
    %22 = arith.mulf %4, %21 : vector<64x32xf32>
    %cst_6 = arith.constant dense<0.000000e+00> : vector<32x32xf32>
    %23 = tpu.matmul %14, %22, %cst_6 {dimension_numbers = #tpu.dot_dimension_numbers<[0], [0], [1], [1], [0, 1, 1, 1], [], []>} : vector<64x32xf32>, vector<64x32xf32>, vector<32x32xf32> -> vector<32x32xf32>
    %c0_7 = arith.constant 0 : index
    %c0_8 = arith.constant 0 : index
    %c0_9 = arith.constant 0 : index
    %24 = vector.load %arg3[%c0_7, %c0_8, %c0_9] : memref<2x32x32xf32, #tpu.memory_space<vmem>>, vector<2x32x32xf32>
    %25 = vector.extract_strided_slice %24 {offsets = [0, 0, 0], sizes = [1, 32, 32], strides = [1, 1, 1]} : vector<2x32x32xf32> to vector<1x32x32xf32>
    %26 = vector.shape_cast %25 : vector<1x32x32xf32> to vector<32x32xf32>
    %27 = arith.mulf %23, %26 : vector<32x32xf32>
    %28 = vector.extract_strided_slice %24 {offsets = [1, 0, 0], sizes = [1, 32, 32], strides = [1, 1, 1]} : vector<2x32x32xf32> to vector<1x32x32xf32>
    %29 = vector.shape_cast %28 : vector<1x32x32xf32> to vector<32x32xf32>
    %30 = arith.addf %27, %29 : vector<32x32xf32>
    %cst_10 = arith.constant dense<0xFF800000> : vector<32xf32>
    %31 = vector.multi_reduction <maximumf>, %30, %cst_10 [1] : vector<32x32xf32> to vector<32xf32>
    %32 = vector.shape_cast %31 : vector<32xf32> to vector<32x1xf32>
    %33 = vector.broadcast %32 : vector<32x1xf32> to vector<32x32xf32>
    %34 = arith.subf %30, %33 : vector<32x32xf32>
    %35 = math.exp %34 : vector<32x32xf32>
    %cst_11 = arith.constant dense<0.000000e+00> : vector<32xf32>
    %36 = vector.multi_reduction <add>, %35, %cst_11 [1] : vector<32x32xf32> to vector<32xf32>
    %37 = vector.shape_cast %36 : vector<32xf32> to vector<32x1xf32>
    %38 = tpu.reciprocal %37 {approx = true} : vector<32x1xf32> -> vector<32x1xf32>
    %39 = vector.broadcast %38 : vector<32x1xf32> to vector<32x32xf32>
    %40 = arith.mulf %35, %39 : vector<32x32xf32>
    %cst_12 = arith.constant dense<0.000000e+00> : vector<64x32xf32>
    %41 = tpu.matmul %6, %40, %cst_12 {dimension_numbers = #tpu.dot_dimension_numbers<[1], [1], [0], [0], [0, 0, 1, 0], [], []>} : vector<64x32xf32>, vector<32x32xf32>, vector<64x32xf32> -> vector<64x32xf32>
    %c0_13 = arith.constant 0 : index
    %c0_14 = arith.constant 0 : index
    %42 = vector.load %arg4[%c0_13, %c0_14] : memref<3x32xf32, #tpu.memory_space<vmem>>, vector<3x32xf32>
    %c0_15 = arith.constant 0 : index
    %c0_16 = arith.constant 0 : index
    %c0_17 = arith.constant 0 : index
    %43 = vector.load %arg1[%c0_15, %c0_16, %c0_17] : memref<1x64x32xf32, #tpu.memory_space<vmem>>, vector<1x64x32xf32>
    %44 = vector.shape_cast %43 : vector<1x64x32xf32> to vector<64x32xf32>
    %45 = arith.addf %44, %41 : vector<64x32xf32>
    %cst_18 = arith.constant dense<0.000000e+00> : vector<64xf32>
    %46 = vector.multi_reduction <add>, %45, %cst_18 [1] : vector<64x32xf32> to vector<64xf32>
    %47 = vector.shape_cast %46 : vector<64xf32> to vector<64x1xf32>
    %cst_19 = arith.constant 3.200000e+01 : f32
    %48 = vector.broadcast %cst_19 : f32 to vector<64x1xf32>
    %49 = arith.divf %47, %48 : vector<64x1xf32>
    %50 = vector.broadcast %49 : vector<64x1xf32> to vector<64x32xf32>
    %51 = arith.subf %45, %50 : vector<64x32xf32>
    %52 = arith.mulf %51, %51 : vector<64x32xf32>
    %cst_20 = arith.constant dense<0.000000e+00> : vector<64xf32>
    %53 = vector.multi_reduction <add>, %52, %cst_20 [1] : vector<64x32xf32> to vector<64xf32>
    %54 = vector.shape_cast %53 : vector<64xf32> to vector<64x1xf32>
    %cst_21 = arith.constant 3.200000e+01 : f32
    %55 = vector.broadcast %cst_21 : f32 to vector<64x1xf32>
    %56 = arith.divf %54, %55 : vector<64x1xf32>
    %57 = vector.broadcast %49 : vector<64x1xf32> to vector<64x32xf32>
    %58 = arith.subf %45, %57 : vector<64x32xf32>
    %cst_22 = arith.constant 9.99999974E-6 : f32
    %59 = vector.broadcast %cst_22 : f32 to vector<64x1xf32>
    %60 = arith.addf %56, %59 : vector<64x1xf32>
    %61 = math.rsqrt %60 : vector<64x1xf32>
    %62 = vector.broadcast %61 : vector<64x1xf32> to vector<64x32xf32>
    %63 = arith.mulf %58, %62 : vector<64x32xf32>
    %64 = vector.extract_strided_slice %42 {offsets = [0, 0], sizes = [1, 32], strides = [1, 1]} : vector<3x32xf32> to vector<1x32xf32>
    %65 = vector.broadcast %64 : vector<1x32xf32> to vector<64x32xf32>
    %66 = arith.mulf %63, %65 : vector<64x32xf32>
    %67 = vector.extract_strided_slice %42 {offsets = [1, 0], sizes = [1, 32], strides = [1, 1]} : vector<3x32xf32> to vector<1x32xf32>
    %68 = vector.broadcast %67 : vector<1x32xf32> to vector<64x32xf32>
    %69 = arith.addf %66, %68 : vector<64x32xf32>
    %c0_23 = arith.constant 0 : index
    %c0_24 = arith.constant 0 : index
    %70 = vector.load %arg5[%c0_23, %c0_24] : memref<32x128xf32, #tpu.memory_space<vmem>>, vector<32x128xf32>
    %cst_25 = arith.constant dense<0.000000e+00> : vector<64x128xf32>
    %71 = tpu.matmul %69, %70, %cst_25 {dimension_numbers = #tpu.dot_dimension_numbers<[1], [0], [0], [1], [0, 0, 1, 1], [], []>} : vector<64x32xf32>, vector<32x128xf32>, vector<64x128xf32> -> vector<64x128xf32>
    %c0_26 = arith.constant 0 : index
    %c0_27 = arith.constant 0 : index
    %72 = vector.load %arg6[%c0_26, %c0_27] : memref<1x128xf32, #tpu.memory_space<vmem>>, vector<1x128xf32>
    %73 = vector.broadcast %72 : vector<1x128xf32> to vector<64x128xf32>
    %74 = arith.addf %71, %73 : vector<64x128xf32>
    %cst_28 = arith.constant 5.000000e-01 : f32
    %75 = vector.broadcast %cst_28 : f32 to vector<64x128xf32>
    %76 = arith.mulf %75, %74 : vector<64x128xf32>
    %cst_29 = arith.constant 0.707106769 : f32
    %77 = vector.broadcast %cst_29 : f32 to vector<64x128xf32>
    %78 = arith.mulf %74, %77 : vector<64x128xf32>
    %79 = math.erf %78 : vector<64x128xf32>
    %cst_30 = arith.constant 1.000000e+00 : f32
    %80 = vector.broadcast %cst_30 : f32 to vector<64x128xf32>
    %81 = arith.addf %80, %79 : vector<64x128xf32>
    %82 = arith.mulf %76, %81 : vector<64x128xf32>
    %c0_31 = arith.constant 0 : index
    %c0_32 = arith.constant 0 : index
    %83 = vector.load %arg7[%c0_31, %c0_32] : memref<128x32xf32, #tpu.memory_space<vmem>>, vector<128x32xf32>
    %cst_33 = arith.constant dense<0.000000e+00> : vector<64x32xf32>
    %84 = tpu.matmul %82, %83, %cst_33 {dimension_numbers = #tpu.dot_dimension_numbers<[1], [0], [0], [1], [0, 0, 1, 1], [], []>} : vector<64x128xf32>, vector<128x32xf32>, vector<64x32xf32> -> vector<64x32xf32>
    %85 = vector.extract_strided_slice %42 {offsets = [2, 0], sizes = [1, 32], strides = [1, 1]} : vector<3x32xf32> to vector<1x32xf32>
    %86 = vector.broadcast %85 : vector<1x32xf32> to vector<64x32xf32>
    %87 = arith.addf %84, %86 : vector<64x32xf32>
    %88 = arith.addf %45, %87 : vector<64x32xf32>
    %c0_34 = arith.constant 0 : index
    %c0_35 = arith.constant 0 : index
    %c0_36 = arith.constant 0 : index
    %89 = vector.load %arg8[%c0_34, %c0_35, %c0_36] : memref<1x64x32xf32, #tpu.memory_space<vmem>>, vector<1x64x32xf32>
    %90 = vector.shape_cast %89 : vector<1x64x32xf32> to vector<64x32xf32>
    %91 = vector.shape_cast %88 : vector<64x32xf32> to vector<1x64x32xf32>
    tpu.vector_store %arg8[%c0_34, %c0_35, %c0_36], %91 {strides = array<i32>} : memref<1x64x32xf32, #tpu.memory_space<vmem>>, vector<1x64x32xf32>,
    return
  }
  func.func @transform_0(%arg0: i32) -> (i32, i32, i32) {
    %c0_i32 = arith.constant 0 : i32
    %c0_i32_0 = arith.constant 0 : i32
    %c0_i32_1 = arith.constant 0 : i32
    return %arg0, %c0_i32, %c0_i32_0 : i32, i32, i32
  }
  func.func @transform_1(%arg0: i32) -> (i32, i32, i32, i32) {
    %c0_i32 = arith.constant 0 : i32
    %c0_i32_0 = arith.constant 0 : i32
    %c0_i32_1 = arith.constant 0 : i32
    %c0_i32_2 = arith.constant 0 : i32
    return %c0_i32, %arg0, %c0_i32_0, %c0_i32_1 : i32, i32, i32, i32
  }
  func.func @transform_2(%arg0: i32) -> (i32, i32, i32) {
    %c0_i32 = arith.constant 0 : i32
    %c0_i32_0 = arith.constant 0 : i32
    %c0_i32_1 = arith.constant 0 : i32
    %c0_i32_2 = arith.constant 0 : i32
    return %c0_i32, %c0_i32_0, %c0_i32_1 : i32, i32, i32
  }
  func.func @transform_3(%arg0: i32) -> (i32, i32) {
    %c0_i32 = arith.constant 0 : i32
    %c0_i32_0 = arith.constant 0 : i32
    %c0_i32_1 = arith.constant 0 : i32
    return %c0_i32, %c0_i32_0 : i32, i32
  }
  func.func @transform_4(%arg0: i32) -> (i32, i32) {
    %c0_i32 = arith.constant 0 : i32
    %c0_i32_0 = arith.constant 0 : i32
    %c0_i32_1 = arith.constant 0 : i32
    return %c0_i32, %c0_i32_0 : i32, i32
  }
  func.func @transform_5(%arg0: i32) -> (i32, i32) {
    %c0_i32 = arith.constant 0 : i32
    %c0_i32_0 = arith.constant 0 : i32
    %c0_i32_1 = arith.constant 0 : i32
    return %c0_i32, %c0_i32_0 : i32, i32
  }
  func.func @transform_6(%arg0: i32) -> (i32, i32) {
    %c0_i32 = arith.constant 0 : i32
    %c0_i32_0 = arith.constant 0 : i32
    %c0_i32_1 = arith.constant 0 : i32
    return %c0_i32, %c0_i32_0 : i32, i32
  }
  func.func @transform_7(%arg0: i32) -> (i32, i32, i32) {
    %c0_i32 = arith.constant 0 : i32
    %c0_i32_0 = arith.constant 0 : i32
    %c0_i32_1 = arith.constant 0 : i32
    return %arg0, %c0_i32, %c0_i32_0 : i32, i32, i32
  }
}

</mosaic_0001>

<bundles_post_ra>
// kernel: swin_block_forward.2
= control target key start
LH: loop header
LB: loop body
LE: loop exit
PB: predicated region body
PF: predicated region fallthrough
CT: control target
= control target key end

     0   :  { %s666_s15 = smov 0   ;;  %s780_s0 = inlined_call_operand.vmem [shape: f32[128,32], index: 0, kind: input, shape index: {}]   ;;  %s781_s1 = inlined_call_operand.vmem [shape: f32[2,32], index: 1, kind: input, shape index: {}]   ;;  %s782_s2 = inlined_call_operand.vmem [shape: f32[32,96], index: 2, kind: input, shape index: {}]   ;;  %s783_s3 = inlined_call_operand.vmem [shape: f32[1,96], index: 3, kind: input, shape index: {}]   ;;  %s784_s4 = inlined_call_operand.vmem [shape: f32[128,96], index: 4, kind: output, shape index: {}]  }
   0x1 LB: > { %s545_s16 = sadd.s32 4294967295, %s639_s15   ;;  %p549_p0 = scmp.ge.s32.totalorder %s639_s15, 1  ;;  %s639_s15 = sphi %s666_s15, %s14_s15  }
   0x2   : > { %p163_p1 = scmp.lt.s32.totalorder %s639_s15, 3 }
   0x4   : > { %p164_p2 = pnand %p549_p0, %p163_p1 }
   0x5   : > { %s550_s17 = sshll.u32 (!%p164_p2), %s545_s16, 3  ;;  %vm209_vm0 = vcmask (!%p164_p2), 261120   ;;  %v340_v56 = vld [vmem:[%s782_s2] sm:$0xff] (!%p164_p2)  ;;  %v341_v57 = vld [vmem:[%s782_s2 + $0x8] sm:$0xff] (!%p164_p2)  ;;  %v342_v59 = vld [vmem:[%s782_s2 + $0x10] sm:$0xff] (!%p164_p2)  ;;  %vm480_vm1 = vcmask (!%p164_p2), 785408  }
   0x6   : > { %167 = sbr.rel (%p164_p2) target bundleno = 562 (0x232), region = 36  ;;  %p190_p3 = scmp.lt.s32.totalorder (!%p164_p2), %s550_s17, 15  ;;  %v597_v58 = vpack.c.bf16 (!%p164_p2), %v341_v57, %v340_v56  ;;  %v343_v60 = vld [vmem:[%s782_s2 + $0x18] sm:$0xff] (!%p164_p2) }
   0x7   : > { %v601_v61 = vpack.c.bf16 (!%p164_p2), %v343_v60, %v342_v59 }
   0x8   : > { %598 = vmatprep.subr.bf16.mxu0 (!%p164_p2), %v597_v58  ;;  %605 = vmatprep.subr.bf16.mxu1 (!%p164_p2), %v597_v58 }
   0x9   : > { %600 = vmatpush3.bf16.msra.mxu0 (!%p164_p2), %v597_v58  ;;  %607 = vmatpush3.bf16.msra.mxu1 (!%p164_p2), %v597_v58 }
   0xa   : > { %602 = vmatprep.subr.bf16.mxu0 (!%p164_p2), %v601_v61  ;;  %606 = vmatprep.subr.bf16.mxu1 (!%p164_p2), %v601_v61 }
   0xd   : > { %s786_s17 = smov (!%p190_p3, %s550_s17), 15  ;;  %604 = vmatpush3.bf16.msra.mxu0 %v601_v61  ;;  %608 = vmatpush3.bf16.msra.mxu1 %v601_v61 }
   0xe   : > { %s551_s18 = sshll.u32 %s786_s17, 3 }
   0xf   : > { %s193_s21 = scalar_lea.vmem %s780_s0, %s551_s18  ;;  %s199_s10 = scalar_lea.vmem %s784_s4, %s551_s18 }
  0x10   : > { %v201_v0 = vld [vmem:[%s193_s21] sm:$0xff]  ;;  %v202_v1 = vld [vmem:[%s193_s21 + $0x8] sm:$0xff]  ;;  %v203_v8 = vld [vmem:[%s193_s21 + $0x10] sm:$0xff] }
  0x11   : > { %v205_v2 = vld [vmem:[%s193_s21 + $0x20] sm:$0xff]  ;;  %v210_v3 = vsel %vm209_vm0, %v201_v0, 0.0  ;;  %v213_v4 = vsel %vm209_vm0, %v202_v1, 0.0  ;;  %v206_v5 = vld [vmem:[%s193_s21 + $0x28] sm:$0xff]  ;;  %v207_v9 = vld [vmem:[%s193_s21 + $0x30] sm:$0xff]  ;;  %v216_v10 = vsel %vm209_vm0, %v203_v8, 0.0 }
  0x12   : > { %211 = vadd.xlane.f32.xlu0 %v210_v3  ;;  %214 = vadd.xlane.f32.xlu1 %v213_v4  ;;  %v222_v6 = vsel %vm209_vm0, %v205_v2, 0.0  ;;  %v225_v7 = vsel %vm209_vm0, %v206_v5, 0.0  ;;  %v228_v11 = vsel %vm209_vm0, %v207_v9, 0.0  ;;  %v204_v12 = vld [vmem:[%s193_s21 + $0x18] sm:$0xff] }
  0x13   : > { %v208_v13 = vld [vmem:[%s193_s21 + $0x38] sm:$0xff]  ;;  %v219_v14 = vsel %vm209_vm0, %v204_v12, 0.0 }
  0x14   : > { %v231_v15 = vsel %vm209_vm0, %v208_v13, 0.0 }
  0x16   : > { %223 = vadd.xlane.f32.xlu0 %v222_v6  ;;  %226 = vadd.xlane.f32.xlu1 %v225_v7 }
  0x1a   : > { %217 = vadd.xlane.f32.xlu0 %v216_v10  ;;  %229 = vadd.xlane.f32.xlu1 %v228_v11 }
  0x1e   : > { %220 = vadd.xlane.f32.xlu0 %v219_v14  ;;  %232 = vadd.xlane.f32.xlu1 %v231_v15 }
  0x9f   : > { %v212_v16 = vpop.xlane.xlu0 %211  ;;  %v215_v17 = vpop.xlane.xlu1 %214 }
  0xa0   : > { %v235_v18 = vmul.f32 0.03125, %v212_v16  ;;  %v236_v19 = vmul.f32 0.03125, %v215_v17  ;;  %v315_v16 = vld [vmem:[%s781_s1] sm:$0x3] }
  0xa2   : > { %v690_v20 = vsub.f32 %v201_v0, %v235_v18  ;;  %v692_v21 = vsub.f32 %v202_v1, %v236_v19  ;;  %v316_v0 = vlaneseq }
  0xa3   : > { %v224_v22 = vpop.xlane.xlu0 %223  ;;  %v227_v23 = vpop.xlane.xlu1 %226 }
  0xa4   : > { %v239_v24 = vmul.f32 0.03125, %v224_v22  ;;  %v240_v25 = vmul.f32 0.03125, %v227_v23  ;;  %v251_v26 = vmul.f32 %v690_v20, %v690_v20  ;;  %v252_v27 = vmul.f32 %v692_v21, %v692_v21 }
  0xa5   : > { %v317_v6 = vshrl.u32 %v316_v0, 7 }
  0xa6   : > { %v698_v28 = vsub.f32 %v205_v2, %v239_v24  ;;  %v700_v29 = vsub.f32 %v206_v5, %v240_v25  ;;  %v259_v30 = vsel %vm209_vm0, %v251_v26, 0.0  ;;  %v262_v33 = vsel %vm209_vm0, %v252_v27, 0.0 }
  0xa7   : > { %260 = vadd.xlane.f32.xlu0 %v259_v30  ;;  %v218_v31 = vpop.xlane.xlu0 %217  ;;  %v230_v32 = vpop.xlane.xlu1 %229  ;;  %v330_v19 = vsub.s32 1, %v317_v6 }
  0xa8   : > { %v237_v34 = vmul.f32 0.03125, %v218_v31  ;;  %v241_v35 = vmul.f32 0.03125, %v230_v32  ;;  %v255_v36 = vmul.f32 %v698_v28, %v698_v28  ;;  %v256_v37 = vmul.f32 %v700_v29, %v700_v29 }
  0xa9   : > { %v331_v32 = vrot.slane %v315_v16, %v330_v19 }
  0xaa   : > { %v708_v38 = vsub.f32 %v203_v8, %v237_v34  ;;  %v710_v39 = vsub.f32 %v207_v9, %v241_v35  ;;  %v271_v40 = vsel %vm209_vm0, %v255_v36, 0.0  ;;  %v274_v43 = vsel %vm209_vm0, %v256_v37, 0.0 }
  0xab   : > { %263 = vadd.xlane.f32.xlu0 %v262_v33  ;;  %272 = vadd.xlane.f32.xlu1 %v271_v40  ;;  %v221_v41 = vpop.xlane.xlu0 %220  ;;  %v233_v42 = vpop.xlane.xlu1 %232 }
  0xac   : > { %v238_v44 = vmul.f32 0.03125, %v221_v41  ;;  %v242_v45 = vmul.f32 0.03125, %v233_v42  ;;  %v253_v46 = vmul.f32 %v708_v38, %v708_v38  ;;  %v257_v47 = vmul.f32 %v710_v39, %v710_v39 }
  0xae   : > { %v718_v48 = vsub.f32 %v204_v12, %v238_v44  ;;  %v720_v49 = vsub.f32 %v208_v13, %v242_v45  ;;  %v265_v50 = vsel %vm209_vm0, %v253_v46, 0.0  ;;  %v277_v51 = vsel %vm209_vm0, %v257_v47, 0.0 }
  0xaf   : > { %275 = vadd.xlane.f32.xlu1 %v274_v43  ;;  %266 = vadd.xlane.f32.xlu0 %v265_v50  ;;  %v318_v13 = vsub.s32 0, %v317_v6 }
  0xb0   : > { %v254_v52 = vmul.f32 %v718_v48, %v718_v48  ;;  %v258_v53 = vmul.f32 %v720_v49, %v720_v49 }
  0xb1   : > { %v319_v24 = vrot.slane %v315_v16, %v318_v13 }
  0xb2   : > { %v268_v54 = vsel %vm209_vm0, %v254_v52, 0.0  ;;  %v280_v55 = vsel %vm209_vm0, %v258_v53, 0.0 }
  0xb3   : > { %278 = vadd.xlane.f32.xlu1 %v277_v51  ;;  %269 = vadd.xlane.f32.xlu0 %v268_v54 }
  0xb7   : > { %281 = vadd.xlane.f32.xlu1 %v280_v55 }
 0x134   : > { %v261_v62 = vpop.xlane.xlu0 %260 }
 0x135   : > { %v283_v63 = vmul.f32 0.03125, %v261_v62 }
 0x137   : > { %v291_v1 = vadd.f32 1e-05, %v283_v63 }
 0x138   : > { %v273_v2 = vpop.xlane.xlu1 %272  ;;  %v264_v3 = vpop.xlane.xlu0 %263 }
 0x139   : > { %617 = vrsqrt.f32 %v291_v1  ;;  %v287_v4 = vmul.f32 0.03125, %v273_v2  ;;  %v284_v5 = vmul.f32 0.03125, %v264_v3 }
 0x13b   : > { %v295_v7 = vadd.f32 1e-05, %v287_v4  ;;  %v292_v8 = vadd.f32 1e-05, %v284_v5 }
 0x13c   : > { %v276_v9 = vpop.xlane.xlu1 %275  ;;  %v267_v10 = vpop.xlane.xlu0 %266 }
 0x13d   : > { %619 = vrsqrt.f32 %v295_v7  ;;  %v288_v11 = vmul.f32 0.03125, %v276_v9  ;;  %v285_v12 = vmul.f32 0.03125, %v267_v10 }
 0x13e   : > { %621 = vrsqrt.f32 %v292_v8 }
 0x13f   : > { %v296_v14 = vadd.f32 1e-05, %v288_v11  ;;  %v293_v15 = vadd.f32 1e-05, %v285_v12 }
 0x140   : > { %v279_v17 = vpop.xlane.xlu1 %278  ;;  %v270_v18 = vpop.xlane.xlu0 %269 }
 0x141   : > { %623 = vrsqrt.f32 %v296_v14  ;;  %v289_v22 = vmul.f32 0.03125, %v279_v17  ;;  %v286_v23 = vmul.f32 0.03125, %v270_v18 }
 0x142   : > { %625 = vrsqrt.f32 %v293_v15 }
 0x143   : > { %v618_v25 = vpop.eup %617  ;;  %v297_v26 = vadd.f32 1e-05, %v289_v22  ;;  %v294_v27 = vadd.f32 1e-05, %v286_v23 }
 0x144   : > { %v282_v30 = vpop.xlane.xlu1 %281  ;;  %v307_v31 = vmul.f32 %v618_v25, %v690_v20 }
 0x145   : > { %627 = vrsqrt.f32 %v297_v26  ;;  %v290_v33 = vmul.f32 0.03125, %v282_v30 }
 0x146   : > { %629 = vrsqrt.f32 %v294_v27  ;;  %v320_v34 = vmul.f32 %v319_v24, %v307_v31 }
 0x147   : > { %v620_v35 = vpop.eup %619  ;;  %v298_v36 = vadd.f32 1e-05, %v290_v33 }
 0x148   : > { %v622_v37 = vpop.eup %621  ;;  %v332_v40 = vadd.f32 %v331_v32, %v320_v34  ;;  %v311_v41 = vmul.f32 %v620_v35, %v698_v28 }
 0x149   : > { %631 = vrsqrt.f32 %v298_v36  ;;  %v308_v42 = vmul.f32 %v622_v37, %v692_v21 }
 0x14a   : > { %585 = vmatprep.mubr.msk.f32.mxu0 %vm209_vm0, %v332_v40  ;;  %v324_v43 = vmul.f32 %v319_v24, %v311_v41 }
 0x14b   : > { %v624_v44 = vpop.eup %623  ;;  %v321_v45 = vmul.f32 %v319_v24, %v308_v42 }
 0x14c   : > { %v626_v20 = vpop.eup %625  ;;  %v336_v46 = vadd.f32 %v331_v32, %v324_v43  ;;  %v312_v47 = vmul.f32 %v624_v44, %v700_v29 }
 0x14d   : > { %v333_v50 = vadd.f32 %v331_v32, %v321_v45  ;;  %v309_v51 = vmul.f32 %v626_v20, %v708_v38 }
 0x14e   : > { %591 = vmatprep.mubr.msk.f32.mxu1 %vm209_vm0, %v336_v46  ;;  %v325_v52 = vmul.f32 %v319_v24, %v312_v47 }
 0x14f   : > { %v628_v53 = vpop.eup %627  ;;  %586 = vmatmul.mubr.msk.f32.vlgmr.msra.gmra.mrb[0].mxu0 %vm209_vm0, %v333_v50  ;;  %v322_v28 = vmul.f32 %v319_v24, %v309_v51 }
 0x150   : > { %v630_v21 = vpop.eup %629  ;;  %v337_v54 = vadd.f32 %v331_v32, %v325_v52  ;;  %v313_v55 = vmul.f32 %v628_v53, %v710_v39 }
 0x151   : > { %v334_v56 = vadd.f32 %v331_v32, %v322_v28  ;;  %v310_v57 = vmul.f32 %v630_v21, %v718_v48  ;;  %v554_v48 = vld [vmem:[%s783_s3] ss:$0 sm:$0xff] }
 0x152   : > { %592 = vmatmul.mubr.msk.f32.vlgmr.msra.gmra.mrb[0].mxu1 %vm209_vm0, %v337_v54  ;;  %v326_v29 = vmul.f32 %v319_v24, %v313_v55 }
 0x153   : > { %v632_v58 = vpop.eup %631  ;;  %588 = vmatprep.mubr.msk.f32.mxu0 %vm209_vm0, %v334_v56  ;;  %v323_v38 = vmul.f32 %v319_v24, %v310_v57 }
 0x154   : > { %v338_v59 = vadd.f32 %v331_v32, %v326_v29  ;;  %v314_v60 = vmul.f32 %v632_v58, %v720_v49 }
 0x155   : > { %v335_v61 = vadd.f32 %v331_v32, %v323_v38 }
 0x156   : > { %594 = vmatprep.mubr.msk.f32.mxu1 %vm209_vm0, %v338_v59  ;;  %v327_v62 = vmul.f32 %v319_v24, %v314_v60 }
 0x157   : > { %589 = vmatmul.mubr.msk.f32.gmra.mrb[2].mxu0 %vm209_vm0, %v335_v61 }
 0x158   : > { %v339_v39 = vadd.f32 %v331_v32, %v327_v62 }
 0x15a   : > { %595 = vmatmul.mubr.msk.f32.gmra.mrb[2].mxu1 %vm209_vm0, %v339_v39 }
 0x222   : > { %v587_v63 = vpop.f32.mrb[0].mxu0 }
 0x223   : > { %v447_v49 = vadd.f32 %v587_v63, %v554_v48  ;;  %v441_v0 = vpop.f32.mrb[1].mxu0 }
 0x224   : > { %v442_v1 = vadd.f32 %v554_v48, %v441_v0 }
 0x225   : > { %482 = vst.msk [vmem:[%s199_s10 + $0x8] sm:$0xff] %vm480_vm1, %v447_v49  ;;  %v593_v2 = vpop.f32.mrb[0].mxu1 }
 0x226   : > { %481 = vst.msk [vmem:[%s199_s10] sm:$0xff] %vm480_vm1, %v442_v1  ;;  %v467_v3 = vadd.f32 %v593_v2, %v554_v48  ;;  %v461_v4 = vpop.f32.mrb[1].mxu1 }
 0x227   : > { %v462_v5 = vadd.f32 %v554_v48, %v461_v4 }
 0x228   : > { %486 = vst.msk [vmem:[%s199_s10 + $0x28] sm:$0xff] %vm480_vm1, %v467_v3 }
 0x229   : > { %485 = vst.msk [vmem:[%s199_s10 + $0x20] sm:$0xff] %vm480_vm1, %v462_v5 }
 0x22a   : > { %v590_v6 = vpop.f32.mrb[2].mxu0 }
 0x22b   : > { %v457_v7 = vadd.f32 %v590_v6, %v554_v48  ;;  %v451_v8 = vpop.f32.mrb[3].mxu0 }
 0x22c   : > { %v452_v9 = vadd.f32 %v554_v48, %v451_v8 }
 0x22d   : > { %484 = vst.msk [vmem:[%s199_s10 + $0x18] sm:$0xff] %vm480_vm1, %v457_v7  ;;  %v596_v10 = vpop.f32.mrb[2].mxu1 }
 0x22e   : > { %483 = vst.msk [vmem:[%s199_s10 + $0x10] sm:$0xff] %vm480_vm1, %v452_v9  ;;  %v477_v11 = vadd.f32 %v596_v10, %v554_v48  ;;  %v471_v12 = vpop.f32.mrb[3].mxu1 }
 0x22f   : > { %v472_v13 = vadd.f32 %v554_v48, %v471_v12 }
 0x230   : > { %488 = vst.msk [vmem:[%s199_s10 + $0x38] sm:$0xff] %vm480_vm1, %v477_v11 }
 0x231   : > { %487 = vst.msk [vmem:[%s199_s10 + $0x30] sm:$0xff] %vm480_vm1, %v472_v13 }
 0x232 PF: > { %s14_s15 = sadd.s32 1, %s639_s15  }
 0x233   : > { %p11_p4 = scmp.ge.s32.totalorder %s14_s15, 4  }
 0x235   :  { %13 = sbr.rel (!%p11_p4) target bundleno = 1 (0x1), region = 66 }

// kernel: swin_block_forward.3
= control target key start
LH: loop header
LB: loop body
LE: loop exit
PB: predicated region body
PF: predicated region fallthrough
CT: control target
= control target key end

     0   :  { %s1834_s24 = smov 0   ;;  %s1836_s25 = smov 0   ;;  %s2315_s0 = inlined_call_operand.vmem [shape: f32[2,64,32], index: 0, kind: input, shape index: {}, may-alias: {0,7}]   ;;  %s2316_s1 = inlined_call_operand.vmem [shape: f32[3,2,64,32], index: 1, kind: input, shape index: {}]   ;;  %s2317_s2 = inlined_call_operand.vmem [shape: f32[2,32,32], index: 2, kind: input, shape index: {}]   ;;  %s2318_s3 = inlined_call_operand.vmem [shape: f32[3,32], index: 3, kind: input, shape index: {}]   ;;  %s2319_s4 = inlined_call_operand.vmem [shape: f32[32,128], index: 4, kind: input, shape index: {}]   ;;  %s2320_s5 = inlined_call_operand.vmem [shape: f32[1,128], index: 5, kind: input, shape index: {}]   ;;  %s2321_s6 = inlined_call_operand.vmem [shape: f32[128,32], index: 6, kind: input, shape index: {}]   ;;  %s2322_s7 = inlined_call_operand.vmem [shape: f32[2,64,32], index: 7, kind: output, shape index: {}, may-alias: {0,7}]  }
   0x1   :  { %s1838_s26 = smov 0  }
   0x2 LB: > { %s1400_s27 = sadd.s32 4294967295, %s1792_s26   ;;  %s1851_s28 = sadd.s32 1, %s1792_s26   ;;  %s1792_s26 = sphi %s1838_s26, %s2325_s26   ;;  %s1788_s25 = sphi %s1836_s25, %s2324_s25   ;;  %s1784_s24 = sphi %s1834_s24, %s2323_s24  }
   0x3   : > { %s47_s29 = ssub.s32 %s1792_s26, %s1851_s28  ;;  %s50_s30 = sadd.s32 1, %s1788_s25 }
   0x4   : > { %p48_p0 = scmp.eq.s32.totalorder %s47_s29, 0  ;;  %p57_p1 = scmp.ne.s32.totalorder %s1788_s25, %s1784_s24 }
   0x5   : > { %p58_p2 = scmp.eq.s32.totalorder %s1792_s26, 0  ;;  %p1403_p4 = scmp.ge.s32.totalorder %s1792_s26, 2 }
   0x6   : > { %s1860_s8 = scalar_select %p48_p0, %s1788_s25, %s50_s30  }
   0x7   : > { %p59_p3 = por %p58_p2, %p57_p1  ;;  %229 = sbr.rel (%p1403_p4) target bundleno = 31 (0x1f), region = 36 }
   0xe   : > { %240 = sbr.rel (!%p59_p3) target bundleno = 31 (0x1f), region = 44  ;;  %s242_s9 = sand.u32 (%p59_p3), 1, %s1788_s25  }
   0xf   : > { %s1438_s10 = sshll.u32 (%p59_p3), %s1792_s26, 6  ;;  %s1691_s11 = smul.u32 (%p59_p3), 192, %s242_s9 }
  0x10   : > { %s1868_s14 = scalar_lea.vmem (%p59_p3), %s2316_s1, %s1438_s10 }
  0x11   : > { %v321_v0 = vld [vmem:[%s1868_s14] sm:$0xff] (%p59_p3)  ;;  %v323_v1 = vld [vmem:[%s1868_s14 + $0x8] sm:$0xff] (%p59_p3)  ;;  %v325_v2 = vld [vmem:[%s1868_s14 + $0x10] sm:$0xff] (%p59_p3)  ;;  %s1876_s15 = scalar_lea.vmem (%p59_p3), [#allocation2], %s1691_s11 }
  0x12   : > { %v327_v3 = vld [vmem:[%s1868_s14 + $0x18] sm:$0xff] (%p59_p3)  ;;  %v329_v4 = vld [vmem:[%s1868_s14 + $0x20] sm:$0xff] (%p59_p3)  ;;  %v331_v5 = vld [vmem:[%s1868_s14 + $0x28] sm:$0xff] (%p59_p3)  ;;  %322 = vst [vmem:[%s1876_s15] sm:$0xff] (%p59_p3), %v321_v0 }
  0x13   : > { %324 = vst [vmem:[%s1876_s15 + $0x8] sm:$0xff] (%p59_p3), %v323_v1  ;;  %326 = vst [vmem:[%s1876_s15 + $0x10] sm:$0xff] (%p59_p3), %v325_v2  ;;  %v333_v6 = vld [vmem:[%s1868_s14 + $0x30] sm:$0xff] (%p59_p3)  ;;  %v335_v7 = vld [vmem:[%s1868_s14 + $0x38] sm:$0xff] (%p59_p3) }
  0x14   : > { %328 = vst [vmem:[%s1876_s15 + $0x18] sm:$0xff] (%p59_p3), %v327_v3  ;;  %330 = vst [vmem:[%s1876_s15 + $0x20] sm:$0xff] (%p59_p3), %v329_v4  ;;  %v337_v8 = vld [vmem:[%s1868_s14 + $0x80] sm:$0xff] (%p59_p3)  ;;  %v339_v9 = vld [vmem:[%s1868_s14 + $0x88] sm:$0xff] (%p59_p3) }
  0x15   : > { %332 = vst [vmem:[%s1876_s15 + $0x28] sm:$0xff] %v331_v5  ;;  %334 = vst [vmem:[%s1876_s15 + $0x30] sm:$0xff] %v333_v6  ;;  %v341_v10 = vld [vmem:[%s1868_s14 + $0x90] sm:$0xff]  ;;  %v343_v11 = vld [vmem:[%s1868_s14 + $0x98] sm:$0xff] }
  0x16   : > { %336 = vst [vmem:[%s1876_s15 + $0x38] sm:$0xff] %v335_v7  ;;  %338 = vst [vmem:[%s1876_s15 + $0x40] sm:$0xff] %v337_v8  ;;  %v345_v12 = vld [vmem:[%s1868_s14 + $0xa0] sm:$0xff]  ;;  %v347_v13 = vld [vmem:[%s1868_s14 + $0xa8] sm:$0xff] }
  0x17   : > { %340 = vst [vmem:[%s1876_s15 + $0x48] sm:$0xff] %v339_v9  ;;  %342 = vst [vmem:[%s1876_s15 + $0x50] sm:$0xff] %v341_v10  ;;  %v349_v14 = vld [vmem:[%s1868_s14 + $0xb0] sm:$0xff]  ;;  %v351_v15 = vld [vmem:[%s1868_s14 + $0xb8] sm:$0xff] }
  0x18   : > { %344 = vst [vmem:[%s1876_s15 + $0x58] sm:$0xff] %v343_v11  ;;  %346 = vst [vmem:[%s1876_s15 + $0x60] sm:$0xff] %v345_v12  ;;  %v353_v16 = vld [vmem:[%s1868_s14 + $0x100] sm:$0xff]  ;;  %v355_v17 = vld [vmem:[%s1868_s14 + $0x108] sm:$0xff] }
  0x19   : > { %348 = vst [vmem:[%s1876_s15 + $0x68] sm:$0xff] %v347_v13  ;;  %350 = vst [vmem:[%s1876_s15 + $0x70] sm:$0xff] %v349_v14  ;;  %v357_v18 = vld [vmem:[%s1868_s14 + $0x110] sm:$0xff]  ;;  %v359_v19 = vld [vmem:[%s1868_s14 + $0x118] sm:$0xff] }
  0x1a   : > { %352 = vst [vmem:[%s1876_s15 + $0x78] sm:$0xff] %v351_v15  ;;  %354 = vst [vmem:[%s1876_s15 + $0x80] sm:$0xff] %v353_v16  ;;  %v361_v20 = vld [vmem:[%s1868_s14 + $0x120] sm:$0xff]  ;;  %v363_v21 = vld [vmem:[%s1868_s14 + $0x128] sm:$0xff] }
  0x1b   : > { %356 = vst [vmem:[%s1876_s15 + $0x88] sm:$0xff] %v355_v17  ;;  %358 = vst [vmem:[%s1876_s15 + $0x90] sm:$0xff] %v357_v18  ;;  %v365_v22 = vld [vmem:[%s1868_s14 + $0x130] sm:$0xff]  ;;  %v367_v23 = vld [vmem:[%s1868_s14 + $0x138] sm:$0xff] }
  0x1c   : > { %360 = vst [vmem:[%s1876_s15 + $0x98] sm:$0xff] %v359_v19  ;;  %362 = vst [vmem:[%s1876_s15 + $0xa0] sm:$0xff] %v361_v20 }
  0x1d   : > { %364 = vst [vmem:[%s1876_s15 + $0xa8] sm:$0xff] %v363_v21  ;;  %366 = vst [vmem:[%s1876_s15 + $0xb0] sm:$0xff] %v365_v22 }
  0x1e   : > { %368 = vst [vmem:[%s1876_s15 + $0xb8] sm:$0xff] %v367_v23 }
  0x1f PF: > { %p1406_p5 = scmp.ge.s32.totalorder %s1792_s26, 1  ;;  %p373_p6 = scmp.lt.s32.totalorder %s1792_s26, 3 }
  0x21   : > { %p374_p7 = pnand %p1406_p5, %p373_p6 }
  0x22   : > { %s380_s16 = sand.u32 (!%p374_p7), 1, %s1784_s24   ;;  %vm458_vm0 = vcmask (!%p374_p7), 261120   ;;  %vm561_vm1 = vcmask (!%p374_p7), 523264   ;;  %p416_p8 = scmp.lt.s32.totalorder (!%p374_p7), %s1400_s27, 1 }
  0x23   : > { %377 = sbr.rel (%p374_p7) target bundleno = 1772 (0x6ec), region = 82  ;;  %vm1624_vm2 = vmpackc.low (!%p374_p7), %vm458_vm0, %vm458_vm0 }
  0x24   : > { %s1692_s17 = smul.u32 (!%p374_p7), 192, %s380_s16 }
  0x26   : > { %s1923_s18 = scalar_lea.vmem (!%p374_p7), [#allocation2], %s1692_s17 }
  0x27   : > { %v1926_v24 = vld [vmem:[%s1923_s18] sm:$0xff] (!%p374_p7)  ;;  %v1929_v25 = vld [vmem:[%s1923_s18 + $0x8] sm:$0xff] (!%p374_p7)  ;;  %v1932_v26 = vld [vmem:[%s1923_s18 + $0x10] sm:$0xff] (!%p374_p7) }
  0x28   : > { %v1935_v27 = vld [vmem:[%s1923_s18 + $0x18] sm:$0xff] (!%p374_p7)  ;;  %v1938_v28 = vld [vmem:[%s1923_s18 + $0x20] sm:$0xff] (!%p374_p7)  ;;  %v450_v29 = vmul.f32 (!%p374_p7), %v1926_v24, %v1926_v24  ;;  %v451_v30 = vmul.f32 (!%p374_p7), %v1929_v25, %v1929_v25  ;;  %v452_v31 = vmul.f32 (!%p374_p7), %v1932_v26, %v1932_v26  ;;  %v1947_v32 = vld [vmem:[%s1923_s18 + $0x28] sm:$0xff] (!%p374_p7) }
  0x29   : > { %v453_v33 = vmul.f32 (!%p374_p7), %v1935_v27, %v1935_v27  ;;  %v1952_v34 = vld [vmem:[%s1923_s18 + $0x40] sm:$0xff] (!%p374_p7)  ;;  %v454_v35 = vmul.f32 (!%p374_p7), %v1938_v28, %v1938_v28  ;;  %v1959_v38 = vld [vmem:[%s1923_s18 + $0x48] sm:$0xff] (!%p374_p7)  ;;  %v1962_v39 = vld [vmem:[%s1923_s18 + $0x50] sm:$0xff] (!%p374_p7)  ;;  %v455_v45 = vmul.f32 (!%p374_p7), %v1947_v32, %v1947_v32 }
  0x2a   : > { %v459_v36 = vsel %vm458_vm0, %v450_v29, 0.0  ;;  %v460_v37 = vsel %vm458_vm0, %v451_v30, 0.0  ;;  %v1965_v40 = vld [vmem:[%s1923_s18 + $0x58] sm:$0xff]  ;;  %v1968_v41 = vld [vmem:[%s1923_s18 + $0x30] sm:$0xff]  ;;  %v462_v43 = vsel %vm458_vm0, %v452_v31, 0.0  ;;  %v1972_v44 = vld [vmem:[%s1923_s18 + $0x60] sm:$0xff]  ;;  %v490_v47 = vmul.f32 %v1952_v34, %v1952_v34 }
  0x2b   : > { %v461_v42 = vadd.f32 %v460_v37, %v459_v36  ;;  %v464_v46 = vsel %vm458_vm0, %v453_v33, 0.0  ;;  %v1980_v48 = vld [vmem:[%s1923_s18 + $0x38] sm:$0xff]  ;;  %v491_v50 = vmul.f32 %v1959_v38, %v1959_v38  ;;  %v492_v51 = vmul.f32 %v1962_v39, %v1962_v39  ;;  %v439_v55 = vld [vmem:[%s1923_s18 + $0x68] sm:$0xff]  ;;  %v440_v63 = vld [vmem:[%s1923_s18 + $0x70] sm:$0xff]  ;;  %s2327_s27 = smov (!%p416_p8, %s1400_s27), 1 }
  0x2c   : > { %v493_v52 = vmul.f32 %v1965_v40, %v1965_v40  ;;  %v456_v53 = vmul.f32 %v1968_v41, %v1968_v41  ;;  %v466_v54 = vsel %vm458_vm0, %v454_v35, 0.0  ;;  %v494_v56 = vmul.f32 %v1972_v44, %v1972_v44  ;;  %v441_v5 = vld [vmem:[%s1923_s18 + $0x78] sm:$0xff]  ;;  %s1439_s17 = sshll.u32 %s2327_s27, 6 }
  0x2d   : > { %v463_v49 = vadd.f32 %v462_v43, %v461_v42  ;;  %v498_v58 = vsel %vm458_vm0, %v490_v47, 0.0  ;;  %v499_v59 = vsel %vm458_vm0, %v491_v50, 0.0  ;;  %v501_v60 = vsel %vm458_vm0, %v492_v51, 0.0  ;;  %s2084_s21 = scalar_lea.vmem %s2315_s0, %s1439_s17  ;;  %s425_s12 = scalar_lea.vmem %s2322_s7, %s1439_s17 }
  0x2e   : > { %v457_v61 = vmul.f32 %v1980_v48, %v1980_v48  ;;  %v468_v62 = vsel %vm458_vm0, %v455_v45, 0.0  ;;  %v500_v0 = vadd.f32 %v499_v59, %v498_v58  ;;  %v495_v2 = vmul.f32 %v439_v55, %v439_v55 }
  0x2f   : > { %v465_v57 = vadd.f32 %v464_v46, %v463_v49  ;;  %v503_v3 = vsel %vm458_vm0, %v493_v52, 0.0  ;;  %v470_v4 = vsel %vm458_vm0, %v456_v53, 0.0  ;;  %v496_v8 = vmul.f32 %v440_v63, %v440_v63 }
  0x30   : > { %v502_v6 = vadd.f32 %v501_v60, %v500_v0  ;;  %v505_v9 = vsel %vm458_vm0, %v494_v56, 0.0  ;;  %v472_v10 = vsel %vm458_vm0, %v457_v61, 0.0  ;;  %v497_v13 = vmul.f32 %v441_v5, %v441_v5 }
  0x31   : > { %v467_v1 = vadd.f32 %v466_v54, %v465_v57  ;;  %v507_v14 = vsel %vm458_vm0, %v495_v2, 0.0  ;;  %v509_v17 = vsel %vm458_vm0, %v496_v8, 0.0 }
  0x32   : > { %v504_v11 = vadd.f32 %v503_v3, %v502_v6  ;;  %v511_v20 = vsel %vm458_vm0, %v497_v13, 0.0 }
  0x33   : > { %v469_v7 = vadd.f32 %v468_v62, %v467_v1 }
  0x34   : > { %v506_v15 = vadd.f32 %v505_v9, %v504_v11  ;;  %v662_v9 = vld [vmem:[%s2317_s2 + $0x18] sm:$0xff] }
  0x35   : > { %v471_v12 = vadd.f32 %v470_v4, %v469_v7 }
  0x36   : > { %v508_v18 = vadd.f32 %v507_v14, %v506_v15  ;;  %v665_v14 = vld [vmem:[%s2317_s2 + $0x30] sm:$0xff] }
  0x37   : > { %v473_v16 = vadd.f32 %v472_v10, %v471_v12  ;;  %v661_v10 = vld [vmem:[%s2317_s2 + $0x10] sm:$0xff] }
  0x38   : > { %v510_v21 = vadd.f32 %v509_v17, %v508_v18  ;;  %v666_v17 = vld [vmem:[%s2317_s2 + $0x38] sm:$0xff] }
  0x39   : > { %v474_v19 = vrot.slane %v473_v16, 4 }
  0x3a   : > { %v512_v23 = vadd.f32 %v511_v20, %v510_v21 }
  0x3b   : > { %v475_v22 = vadd.f32 %v474_v19, %v473_v16 }
  0x3c   : > { %v513_v30 = vrot.slane %v512_v23, 4 }
  0x3d   : > { %v476_v29 = vrot.slane %v475_v22, 2 }
  0x3e   : > { %v514_v33 = vadd.f32 %v513_v30, %v512_v23 }
  0x3f   : > { %v477_v31 = vadd.f32 %v476_v29, %v475_v22 }
  0x40   : > { %v515_v36 = vrot.slane %v514_v33, 2 }
  0x41   : > { %v478_v35 = vrot.slane %v477_v31, 1 }
  0x42   : > { %v516_v42 = vadd.f32 %v515_v36, %v514_v33 }
  0x43   : > { %v479_v37 = vadd.f32 %v478_v35, %v477_v31 }
  0x44   : > { %v517_v45 = vrot.slane %v516_v42, 1 }
  0x45   : > { %v480_v43 = vmax.f32 %v479_v37, 1e-24 }
  0x46   : > { %v518_v46 = vadd.f32 %v517_v45, %v516_v42 }
  0x47   : > { %1718 = vrsqrt.f32 %v480_v43 }
  0x48   : > { %v519_v47 = vmax.f32 %v518_v46, 1e-24 }
  0x4a   : > { %1720 = vrsqrt.f32 %v519_v47 }
  0x51   : > { %v1719_v49 = vpop.eup %1718 }
  0x52   : > { %v482_v50 = vmul.f32 %v1719_v49, %v1926_v24  ;;  %v483_v51 = vmul.f32 %v1719_v49, %v1929_v25  ;;  %v484_v58 = vmul.f32 %v1719_v49, %v1932_v26  ;;  %v485_v25 = vmul.f32 %v1719_v49, %v1935_v27 }
  0x53   : > { %v489_v27 = vmul.f32 %v1719_v49, %v1980_v48  ;;  %v664_v48 = vld [vmem:[%s2317_s2 + $0x28] sm:$0xff] }
  0x54   : > { %529 = vxpose.xlu0.b32.start [1/8] (short) (narrow) %v482_v50, 32  ;;  %v1721_v52 = vpop.eup %1720 }
  0x55   : > { %v521_v53 = vmul.f32 %v1721_v52, %v1952_v34  ;;  %v522_v54 = vmul.f32 %v1721_v52, %v1959_v38  ;;  %v523_v56 = vmul.f32 %v1721_v52, %v1962_v39  ;;  %v524_v57 = vmul.f32 %v1721_v52, %v1965_v40 }
  0x56   : > { %v525_v61 = vmul.f32 %v1721_v52, %v1972_v44  ;;  %v526_v24 = vmul.f32 %v1721_v52, %v439_v55  ;;  %v527_v38 = vmul.f32 %v1721_v52, %v440_v63  ;;  %v528_v62 = vmul.f32 %v1721_v52, %v441_v5  ;;  %v663_v5 = vld [vmem:[%s2317_s2 + $0x20] sm:$0xff] }
  0x57   : > { %v1607_v59 = vpack.c.bf16 %v522_v54, %v521_v53  ;;  %v1611_v60 = vpack.c.bf16 %v524_v57, %v523_v56  ;;  %v486_v39 = vmul.f32 %v1719_v49, %v1938_v28  ;;  %v487_v40 = vmul.f32 %v1719_v49, %v1947_v32  ;;  %v660_v32 = vld [vmem:[%s2317_s2 + $0x8] sm:$0xff]  ;;  %v442_v56 = vld [vmem:[%s1923_s18 + $0x80] sm:$0xff] }
  0x58   : > { %530 = vxpose.xlu0.b32.cont [2/8] (short) (narrow) %v483_v51, 32  ;;  %v1615_v34 = vpack.c.bf16 %v526_v24, %v525_v61  ;;  %v1619_v26 = vpack.c.bf16 %v528_v62, %v527_v38  ;;  %v488_v44 = vmul.f32 %v1719_v49, %v1968_v41  ;;  %v659_v41 = vld [vmem:[%s2317_s2] sm:$0xff]  ;;  %1531 = vmatprep.mubr.msk.f32.mxu1 %vm458_vm0, %v442_v56 }
  0x59   : > { %1608 = vmatprep.subr.bf16.mxu0 %v1607_v59 }
  0x5a   : > { %1610 = vmatpush3.bf16.msra.mxu0 %v1607_v59 }
  0x5b   : > { %1612 = vmatprep.subr.bf16.mxu0 %v1611_v60 }
  0x5c   : > { %531 = vxpose.xlu0.b32.cont [3/8] (short) (narrow) %v484_v58, 32 }
  0x5e   : > { %1614 = vmatpush3.bf16.msra.mxu0 %v1611_v60 }
  0x5f   : > { %1616 = vmatprep.subr.bf16.mxu0 %v1615_v34 }
  0x60   : > { %532 = vxpose.xlu0.b32.cont [4/8] (short) (narrow) %v485_v25, 32 }
  0x62   : > { %1618 = vmatpush3.bf16.msra.mxu0 %v1615_v34 }
  0x63   : > { %1620 = vmatprep.subr.bf16.mxu0 %v1619_v26 }
  0x64   : > { %533 = vxpose.xlu0.b32.cont [5/8] (short) (narrow) %v486_v39, 32 }
  0x66   : > { %1622 = vmatpush3.bf16.msra.mxu0 %v1619_v26 }
  0x68   : > { %534 = vxpose.xlu0.b32.cont [6/8] (short) (narrow) %v487_v40, 32 }
  0x6c   : > { %535 = vxpose.xlu0.b32.cont [7/8] (short) (narrow) %v488_v44, 32 }
  0x70   : > { %536 = vxpose.xlu0.b32.end [8/8] (short) (narrow) %v489_v27, 32  ;;  %v443_v27 = vld [vmem:[%s1923_s18 + $0x88] sm:$0xff] }
  0xd4   : > { %v545_v55 = vpop.trf.xlu0 }
  0xd5   : > { %1517 = vmatprep.mubr.msk.f32.mxu0 %vm561_vm1, %v545_v55  ;;  %v444_v55 = vld [vmem:[%s1923_s18 + $0x90] sm:$0xff] }
  0xd8   : > { %v546_v28 = vpop.trf.xlu0 }
  0xd9   : > { %1518 = vmatmul.mubr.msk.f32.vlgmr.msra.gmra.mrb[0].mxu0 %vm561_vm1, %v546_v28  ;;  %v445_v28 = vld [vmem:[%s1923_s18 + $0x98] sm:$0xff] }
  0xdc   : > { %v547_v63 = vpop.trf.xlu0 }
  0xdd   : > { %1520 = vmatprep.mubr.msk.f32.mxu0 %vm561_vm1, %v547_v63  ;;  %v446_v63 = vld [vmem:[%s1923_s18 + $0xa0] sm:$0xff] }
  0xe0   : > { %v548_v0 = vpop.trf.xlu0 }
  0xe1   : > { %1521 = vmatmul.mubr.msk.f32.gmra.mrb[2].mxu0 %vm561_vm1, %v548_v0  ;;  %v447_v0 = vld [vmem:[%s1923_s18 + $0xa8] sm:$0xff] }
 0x1ac   : > { %v1519_v1 = vpop.f32.mrb[0].mxu0 }
 0x1ad   : > { %v668_v2 = vmul.f32 %v1519_v1, %v660_v32  ;;  %v640_v3 = vpop.f32.mrb[1].mxu0  ;;  %v448_v32 = vld [vmem:[%s1923_s18 + $0xb0] sm:$0xff]  ;;  %v862_v1 = vld [vmem:[%s2084_s21 + $0x8] sm:$0xff] }
 0x1ae   : > { %v667_v4 = vmul.f32 %v659_v41, %v640_v3  ;;  %v449_v41 = vld [vmem:[%s1923_s18 + $0xb8] sm:$0xff] }
 0x1af   : > { %v672_v6 = vadd.f32 %v668_v2, %v664_v48  ;;  %v861_v48 = vld [vmem:[%s2084_s21] sm:$0xff] }
 0x1b0   : > { %v671_v8 = vadd.f32 %v667_v4, %v663_v5 }
 0x1b1   : > { %v678_v7 = vsel %vm458_vm0, %v672_v6, -inf }
 0x1b2   : > { %679 = vmax.xlane.f32.xlu1 %v678_v7  ;;  %v675_v13 = vsel %vm458_vm0, %v671_v8, -inf }
 0x1b4   : > { %v1522_v11 = vpop.f32.mrb[2].mxu0 }
 0x1b5   : > { %v650_v12 = vpop.f32.mrb[3].mxu0  ;;  %v670_v15 = vmul.f32 %v1522_v11, %v662_v9 }
 0x1b6   : > { %v669_v16 = vmul.f32 %v661_v10, %v650_v12  ;;  %676 = vmax.xlane.f32.xlu1 %v675_v13  ;;  %v863_v10 = vld [vmem:[%s2084_s21 + $0x10] sm:$0xff]  ;;  %v866_v13 = vld [vmem:[%s2084_s21 + $0x28] sm:$0xff] }
 0x1b7   : > { %v674_v20 = vadd.f32 %v670_v15, %v666_v17 }
 0x1b8   : > { %v673_v18 = vadd.f32 %v669_v16, %v665_v14 }
 0x1b9   : > { %v684_v21 = vsel %vm458_vm0, %v674_v20, -inf }
 0x1ba   : > { %v681_v19 = vsel %vm458_vm0, %v673_v18, -inf }
 0x1bb   : > { %682 = vmax.xlane.f32.xlu1 %v681_v19 }
 0x1bf   : > { %685 = vmax.xlane.f32.xlu1 %v684_v21 }
 0x23f   : > { %v680_v22 = vpop.xlane.xlu1 %679 }
 0x240   : > { %v688_v23 = vsub.f32 %v672_v6, %v680_v22  ;;  %v864_v6 = vld [vmem:[%s2084_s21 + $0x18] sm:$0xff] }
 0x242   : > { %v693_v29 = vmul.f32 1.442695, %v688_v23 }
 0x243   : > { %v677_v30 = vpop.xlane.xlu1 %676 }
 0x244   : > { %1722 = vpow2.f32 %v693_v29  ;;  %v687_v31 = vsub.f32 %v671_v8, %v677_v30  ;;  %v867_v29 = vld [vmem:[%s2084_s21 + $0x30] sm:$0xff] }
 0x246   : > { %v691_v33 = vmul.f32 1.442695, %v687_v31 }
 0x248   : > { %1724 = vpow2.f32 %v691_v33  ;;  %v683_v35 = vpop.xlane.xlu1 %682 }
 0x249   : > { %v689_v36 = vsub.f32 %v673_v18, %v683_v35  ;;  %v868_v35 = vld [vmem:[%s2084_s21 + $0x38] sm:$0xff] }
 0x24b   : > { %v695_v37 = vmul.f32 1.442695, %v689_v36 }
 0x24c   : > { %v686_v42 = vpop.xlane.xlu1 %685 }
 0x24d   : > { %1726 = vpow2.f32 %v695_v37  ;;  %v690_v43 = vsub.f32 %v674_v20, %v686_v42  ;;  %v865_v20 = vld [vmem:[%s2084_s21 + $0x20] sm:$0xff] }
 0x24e   : > { %v1723_v45 = vpop.eup %1722 }
 0x24f   : > { %v697_v46 = vmul.f32 1.442695, %v690_v43  ;;  %v702_v47 = vsel %vm458_vm0, %v1723_v45, 0.0 }
 0x250   : > { %703 = vadd.xlane.f32.xlu1 %v702_v47 }
 0x251   : > { %1728 = vpow2.f32 %v697_v46 }
 0x252   : > { %v1725_v49 = vpop.eup %1724 }
 0x253   : > { %v699_v50 = vsel %vm458_vm0, %v1725_v49, 0.0 }
 0x254   : > { %700 = vadd.xlane.f32.xlu1 %v699_v50 }
 0x257   : > { %v1727_v51 = vpop.eup %1726 }
 0x258   : > { %v705_v52 = vsel %vm458_vm0, %v1727_v51, 0.0 }
 0x259   : > { %706 = vadd.xlane.f32.xlu1 %v705_v52 }
 0x25b   : > { %v1729_v53 = vpop.eup %1728 }
 0x25c   : > { %v708_v54 = vsel %vm458_vm0, %v1729_v53, 0.0 }
 0x25d   : > { %709 = vadd.xlane.f32.xlu1 %v708_v54 }
 0x2dd   : > { %v704_v57 = vpop.xlane.xlu1 %703 }
 0x2de   : > { %1730 = vrcp.f32 %v704_v57 }
 0x2e1   : > { %v701_v58 = vpop.xlane.xlu1 %700 }
 0x2e2   : > { %1732 = vrcp.f32 %v701_v58 }
 0x2e6   : > { %v707_v59 = vpop.xlane.xlu1 %706 }
 0x2e7   : > { %1734 = vrcp.f32 %v707_v59 }
 0x2e8   : > { %v1731_v60 = vpop.eup %1730 }
 0x2e9   : > { %v716_v34 = vmul.f32 %v1731_v60, %v1723_v45 }
 0x2ea   : > { %v710_v61 = vpop.xlane.xlu1 %709 }
 0x2eb   : > { %1736 = vrcp.f32 %v710_v61 }
 0x2ec   : > { %v1733_v24 = vpop.eup %1732 }
 0x2ed   : > { %v715_v25 = vmul.f32 %v1733_v24, %v1725_v49 }
 0x2ef   : > { %v1623_v38 = vpack.c.bf16 %v716_v34, %v715_v25 }
 0x2f1   : > { %1625 = vmatprep.subr.msk.bf16.mxu1 %vm1624_vm2, %v1623_v38  ;;  %v1735_v62 = vpop.eup %1734 }
 0x2f2   : > { %1628 = vmatpush3.bf16.xpose.msk.msra.mxu1 %vm1624_vm2, %v1623_v38  ;;  %v717_v26 = vmul.f32 %v1735_v62, %v1727_v51 }
 0x2f5   : > { %v1737_v39 = vpop.eup %1736 }
 0x2f6   : > { %v718_v40 = vmul.f32 %v1737_v39, %v1729_v53 }
 0x2f8   : > { %v1629_v44 = vpack.c.bf16 %v718_v40, %v717_v26 }
 0x2fa   : > { %1631 = vmatprep.subr.msk.bf16.mxu1 %vm1624_vm2, %v1629_v44 }
 0x2fb   : > { %1634 = vmatpush3.bf16.xpose.msk.msra.mxu1 %vm1624_vm2, %v1629_v44 }
 0x302   : > { %1532 = vmatmul.mubr.msk.f32.vlgmr.msra.gmra.mrb[0].mxu1 %vm458_vm0, %v443_v27 }
 0x303   : > { %1534 = vmatprep.mubr.msk.f32.mxu1 %vm458_vm0, %v444_v55 }
 0x306   : > { %1535 = vmatmul.mubr.msk.f32.gmra.mrb[2].mxu1 %vm458_vm0, %v445_v28 }
 0x307   : > { %1537 = vmatprep.mubr.msk.f32.mxu1 %vm458_vm0, %v446_v63 }
 0x30a   : > { %1538 = vmatmul.mubr.msk.f32.gmra.mrb[4].mxu1 %vm458_vm0, %v447_v0 }
 0x30b   : > { %1540 = vmatprep.mubr.msk.f32.mxu1 %vm458_vm0, %v448_v32 }
 0x30e   : > { %1541 = vmatmul.mubr.msk.f32.gmra.mrb[6].mxu1 %vm458_vm0, %v449_v41 }
 0x3d5   : > { %v1533_v2 = vpop.f32.mrb[0].mxu1 }
 0x3d6   : > { %v2088_v3 = vadd.f32 %v1533_v2, %v862_v1  ;;  %v821_v4 = vpop.f32.mrb[1].mxu1 }
 0x3d7   : > { %v2090_v5 = vadd.f32 %v861_v48, %v821_v4 }
 0x3d8   : > { %v880_v7 = vsel %vm458_vm0, %v2088_v3, 0.0 }
 0x3d9   : > { %881 = vadd.xlane.f32.xlu1 %v880_v7  ;;  %v1536_v8 = vpop.f32.mrb[2].mxu1  ;;  %v877_v9 = vsel %vm458_vm0, %v2090_v5, 0.0 }
 0x3da   : > { %v2098_v11 = vadd.f32 %v1536_v8, %v864_v6  ;;  %878 = vadd.xlane.f32.xlu0 %v877_v9  ;;  %v831_v12 = vpop.f32.mrb[3].mxu1 }
 0x3db   : > { %v2101_v14 = vadd.f32 %v863_v10, %v831_v12  ;;  %v1006_v10 = vld [vmem:[%s2319_s4] sm:$0xff]  ;;  %v1007_v12 = vld [vmem:[%s2319_s4 + $0x8] sm:$0xff] }
 0x3dc   : > { %v886_v15 = vsel %vm458_vm0, %v2098_v11, 0.0 }
 0x3dd   : > { %887 = vadd.xlane.f32.xlu1 %v886_v15  ;;  %v1539_v16 = vpop.f32.mrb[4].mxu1  ;;  %v883_v19 = vsel %vm458_vm0, %v2101_v14, 0.0  ;;  %v1008_v15 = vld [vmem:[%s2319_s4 + $0x10] sm:$0xff] }
 0x3de   : > { %v2105_v17 = vadd.f32 %v1539_v16, %v866_v13  ;;  %v841_v18 = vpop.f32.mrb[5].mxu1  ;;  %v1635_v13 = vpack.c.bf16 %v1007_v12, %v1006_v10  ;;  %v1009_v16 = vld [vmem:[%s2319_s4 + $0x18] sm:$0xff] }
 0x3df   : > { %v2113_v30 = vadd.f32 %v865_v20, %v841_v18  ;;  %v1639_v18 = vpack.c.bf16 %v1009_v16, %v1008_v15  ;;  %v1187_v20 = vld [vmem:[%s2321_s6 + $0x8] sm:$0xff] }
 0x3e0   : > { %v892_v22 = vsel %vm458_vm0, %v2105_v17, 0.0  ;;  %1636 = vmatprep.subr.bf16.mxu0 %v1635_v13 }
 0x3e1   : > { %884 = vadd.xlane.f32.xlu1 %v883_v19  ;;  %v1542_v21 = vpop.f32.mrb[6].mxu1  ;;  %v889_v33 = vsel %vm458_vm0, %v2113_v30, 0.0  ;;  %1638 = vmatpush3.bf16.msra.mxu0 %v1635_v13  ;;  %v1186_v19 = vld [vmem:[%s2321_s6] sm:$0xff] }
 0x3e2   : > { %v851_v23 = vpop.f32.mrb[7].mxu1  ;;  %v2122_v37 = vadd.f32 %v1542_v21, %v868_v35  ;;  %1640 = vmatprep.subr.bf16.mxu0 %v1639_v18  ;;  %v1188_v21 = vld [vmem:[%s2321_s6 + $0x10] sm:$0xff]  ;;  %v1191_v35 = vld [vmem:[%s2321_s6 + $0x28] sm:$0xff] }
 0x3e3   : > { %v2115_v31 = vadd.f32 %v867_v29, %v851_v23  ;;  %v1189_v23 = vld [vmem:[%s2321_s6 + $0x18] sm:$0xff] }
 0x3e4   : > { %v898_v42 = vsel %vm458_vm0, %v2122_v37, 0.0  ;;  %v2201_v29 = vpack.c.bf16 %v1189_v23, %v1188_v21 }
 0x3e5   : > { %893 = vadd.xlane.f32.xlu1 %v892_v22  ;;  %v895_v36 = vsel %vm458_vm0, %v2115_v31, 0.0  ;;  %1642 = vmatpush3.bf16.msra.mxu0 %v1639_v18  ;;  %v2195_v22 = vpack.c.bf16 %v1187_v20, %v1186_v19 }
 0x3e7   : > { %1644 = vmatprep.subr.bf16.mxu0 %v2195_v22  ;;  %1675 = vmatprep.subr.bf16.mxu1 %v2195_v22 }
 0x3e8   : > { %1683 = vmatpush3.bf16.msra.mxu1 %v2195_v22 }
 0x3e9   : > { %890 = vadd.xlane.f32.xlu1 %v889_v33  ;;  %v1190_v33 = vld [vmem:[%s2321_s6 + $0x20] sm:$0xff]  ;;  %1676 = vmatprep.subr.bf16.mxu1 %v2201_v29 }
 0x3ec   : > { %1684 = vmatpush3.bf16.msra.mxu1 %v2201_v29 }
 0x3ed   : > { %896 = vadd.xlane.f32.xlu1 %v895_v36  ;;  %v2212_v36 = vpack.c.bf16 %v1191_v35, %v1190_v33 }
 0x3ef   : > { %1677 = vmatprep.subr.bf16.mxu1 %v2212_v36 }
 0x3f0   : > { %1685 = vmatpush3.bf16.msra.mxu1 %v2212_v36 }
 0x3f1   : > { %899 = vadd.xlane.f32.xlu1 %v898_v42 }
 0x466   : > { %v882_v43 = vpop.xlane.xlu1 %881 }
 0x467   : > { %v903_v45 = vmul.f32 0.03125, %v882_v43  ;;  %v879_v46 = vpop.xlane.xlu0 %878 }
 0x468   : > { %v902_v47 = vmul.f32 0.03125, %v879_v46 }
 0x469   : > { %v2127_v49 = vsub.f32 %v2088_v3, %v903_v45 }
 0x46a   : > { %v2130_v50 = vsub.f32 %v2090_v5, %v902_v47  ;;  %v888_v51 = vpop.xlane.xlu1 %887  ;;  %v982_v47 = vlaneseq }
 0x46b   : > { %v905_v52 = vmul.f32 0.03125, %v888_v51  ;;  %v919_v53 = vmul.f32 %v2127_v49, %v2127_v49 }
 0x46c   : > { %v918_v57 = vmul.f32 %v2130_v50, %v2130_v50 }
 0x46d   : > { %v2135_v54 = vsub.f32 %v2098_v11, %v905_v52  ;;  %v929_v56 = vsel %vm458_vm0, %v919_v53, 0.0 }
 0x46e   : > { %v885_v58 = vpop.xlane.xlu1 %884  ;;  %930 = vadd.xlane.f32.xlu1 %v929_v56  ;;  %v926_v61 = vsel %vm458_vm0, %v918_v57, 0.0  ;;  %v2217_v56 = vshrl.u32 %v982_v47, 7 }
 0x46f   : > { %v904_v59 = vmul.f32 0.03125, %v885_v58  ;;  %v921_v24 = vmul.f32 %v2135_v54, %v2135_v54 }
 0x471   : > { %v2141_v60 = vsub.f32 %v2101_v14, %v904_v59  ;;  %v935_v62 = vsel %vm458_vm0, %v921_v24, 0.0  ;;  %v984_v24 = vsub.s32 0, %v2217_v56 }
 0x472   : > { %v894_v25 = vpop.xlane.xlu1 %893  ;;  %927 = vadd.xlane.f32.xlu1 %v926_v61 }
 0x473   : > { %v907_v34 = vmul.f32 0.03125, %v894_v25  ;;  %v920_v39 = vmul.f32 %v2141_v60, %v2141_v60 }
 0x475   : > { %v2147_v38 = vsub.f32 %v2105_v17, %v907_v34  ;;  %v932_v28 = vsel %vm458_vm0, %v920_v39, 0.0 }
 0x476   : > { %v891_v26 = vpop.xlane.xlu1 %890  ;;  %936 = vadd.xlane.f32.xlu1 %v935_v62  ;;  %v2223_v62 = vld [vmem:[%s2318_s3] sm:$0x7] }
 0x477   : > { %v906_v40 = vmul.f32 0.03125, %v891_v26  ;;  %v923_v44 = vmul.f32 %v2147_v38, %v2147_v38 }
 0x479   : > { %v2155_v27 = vsub.f32 %v2113_v30, %v906_v40  ;;  %v941_v55 = vsel %vm458_vm0, %v923_v44, 0.0  ;;  %v996_v44 = vsub.s32 1, %v2217_v56 }
 0x47a   : > { %942 = vadd.xlane.f32.xlu0 %v941_v55  ;;  %933 = vadd.xlane.f32.xlu1 %v932_v28  ;;  %v897_v63 = vpop.xlane.xlu1 %896  ;;  %v985_v28 = vrot.slane %v2223_v62, %v984_v24 }
 0x47b   : > { %v908_v0 = vmul.f32 0.03125, %v897_v63  ;;  %v922_v32 = vmul.f32 %v2155_v27, %v2155_v27 }
 0x47d   : > { %v2162_v41 = vsub.f32 %v2115_v31, %v908_v0  ;;  %v938_v1 = vsel %vm458_vm0, %v922_v32, 0.0 }
 0x47e   : > { %939 = vadd.xlane.f32.xlu1 %v938_v1  ;;  %v900_v48 = vpop.xlane.xlu1 %899 }
 0x47f   : > { %v909_v2 = vmul.f32 0.03125, %v900_v48  ;;  %v924_v4 = vmul.f32 %v2162_v41, %v2162_v41 }
 0x481   : > { %v2168_v6 = vsub.f32 %v2122_v37, %v909_v2  ;;  %v944_v7 = vsel %vm458_vm0, %v924_v4, 0.0  ;;  %v997_v4 = vrot.slane %v2223_v62, %v996_v44 }
 0x482   : > { %945 = vadd.xlane.f32.xlu1 %v944_v7 }
 0x483   : > { %v925_v8 = vmul.f32 %v2168_v6, %v2168_v6 }
 0x485   : > { %v947_v9 = vsel %vm458_vm0, %v925_v8, 0.0 }
 0x486   : > { %948 = vadd.xlane.f32.xlu0 %v947_v9 }
 0x4fb   : > { %v931_v42 = vpop.xlane.xlu1 %930 }
 0x4fc   : > { %v951_v43 = vmul.f32 0.03125, %v931_v42 }
 0x4fe   : > { %v959_v45 = vadd.f32 1e-05, %v951_v43 }
 0x4ff   : > { %v928_v46 = vpop.xlane.xlu1 %927 }
 0x500   : > { %1738 = vrsqrt.f32 %v959_v45  ;;  %v950_v51 = vmul.f32 0.03125, %v928_v46 }
 0x502   : > { %v958_v52 = vadd.f32 1e-05, %v950_v51 }
 0x503   : > { %v937_v53 = vpop.xlane.xlu1 %936 }
 0x504   : > { %1740 = vrsqrt.f32 %v958_v52  ;;  %v953_v57 = vmul.f32 0.03125, %v937_v53 }
 0x506   : > { %v961_v58 = vadd.f32 1e-05, %v953_v57 }
 0x507   : > { %v943_v59 = vpop.xlane.xlu0 %942  ;;  %v934_v61 = vpop.xlane.xlu1 %933 }
 0x508   : > { %1742 = vrsqrt.f32 %v961_v58  ;;  %v955_v25 = vmul.f32 0.03125, %v943_v59  ;;  %v952_v34 = vmul.f32 0.03125, %v934_v61  ;;  %v1195_v61 = vld [vmem:[%s2321_s6 + $0x48] sm:$0xff] }
 0x50a   : > { %v1739_v39 = vpop.eup %1738  ;;  %v963_v26 = vadd.f32 1e-05, %v955_v25  ;;  %v960_v40 = vadd.f32 1e-05, %v952_v34  ;;  %v1196_v25 = vld [vmem:[%s2321_s6 + $0x50] sm:$0xff]  ;;  %v1197_v34 = vld [vmem:[%s2321_s6 + $0x58] sm:$0xff] }
 0x50b   : > { %v940_v55 = vpop.xlane.xlu1 %939  ;;  %v975_v63 = vmul.f32 %v1739_v39, %v2127_v49  ;;  %v1663_v39 = vpack.c.bf16 %v1197_v34, %v1196_v25 }
 0x50c   : > { %1744 = vrsqrt.f32 %v963_v26  ;;  %v954_v0 = vmul.f32 0.03125, %v940_v55  ;;  %v1198_v26 = vld [vmem:[%s2321_s6 + $0x60] sm:$0xff]  ;;  %v1200_v55 = vld [vmem:[%s2321_s6 + $0x70] sm:$0xff] }
 0x50d   : > { %1746 = vrsqrt.f32 %v960_v40  ;;  %v987_v7 = vmul.f32 %v985_v28, %v975_v63  ;;  %v1199_v40 = vld [vmem:[%s2321_s6 + $0x68] sm:$0xff] }
 0x50e   : > { %v1741_v32 = vpop.eup %1740  ;;  %v962_v1 = vadd.f32 1e-05, %v954_v0  ;;  %v1667_v44 = vpack.c.bf16 %v1199_v40, %v1198_v26  ;;  %v1427_v0 = vld [vmem:[%s2320_s5] ss:$0 sm:$0xff] }
 0x50f   : > { %v946_v48 = vpop.xlane.xlu1 %945  ;;  %v974_v2 = vmul.f32 %v1741_v32, %v2130_v50  ;;  %v999_v16 = vadd.f32 %v997_v4, %v987_v7 }
 0x510   : > { %1748 = vrsqrt.f32 %v962_v1  ;;  %v956_v8 = vmul.f32 0.03125, %v946_v48 }
 0x511   : > { %v986_v9 = vmul.f32 %v985_v28, %v974_v2 }
 0x512   : > { %v1743_v10 = vpop.eup %1742  ;;  %v964_v12 = vadd.f32 1e-05, %v956_v8 }
 0x513   : > { %v949_v13 = vpop.xlane.xlu0 %948  ;;  %v998_v15 = vadd.f32 %v997_v4, %v986_v9  ;;  %v977_v18 = vmul.f32 %v1743_v10, %v2135_v54 }
 0x514   : > { %1750 = vrsqrt.f32 %v964_v12  ;;  %v957_v49 = vmul.f32 0.03125, %v949_v13 }
 0x515   : > { %1551 = vmatprep.mubr.msk.f32.mxu0 %vm458_vm0, %v998_v15  ;;  %v989_v23 = vmul.f32 %v985_v28, %v977_v18 }
 0x516   : > { %v1745_v19 = vpop.eup %1744  ;;  %v965_v20 = vadd.f32 1e-05, %v957_v49  ;;  %1552 = vmatmul.mubr.msk.f32.vlgmr.msra.gmra.mrb[4].mxu0 %vm458_vm0, %v999_v16 }
 0x517   : > { %v1747_v50 = vpop.eup %1746  ;;  %1646 = vmatpush3.bf16.msra.mxu0 %v2195_v22  ;;  %v979_v33 = vmul.f32 %v1745_v19, %v2147_v38  ;;  %v1001_v45 = vadd.f32 %v997_v4, %v989_v23 }
 0x518   : > { %1752 = vrsqrt.f32 %v965_v20  ;;  %v976_v21 = vmul.f32 %v1747_v50, %v2141_v60  ;;  %1648 = vmatprep.subr.bf16.mxu0 %v2201_v29 }
 0x519   : > { %v991_v22 = vmul.f32 %v985_v28, %v979_v33 }
 0x51a   : > { %v1749_v35 = vpop.eup %1748  ;;  %v988_v42 = vmul.f32 %v985_v28, %v976_v21 }
 0x51b   : > { %v978_v43 = vmul.f32 %v1749_v35, %v2155_v27  ;;  %1650 = vmatpush3.bf16.msra.mxu0 %v2201_v29  ;;  %v1003_v27 = vadd.f32 %v997_v4, %v991_v22 }
 0x51c   : > { %v1000_v54 = vadd.f32 %v997_v4, %v988_v42  ;;  %1652 = vmatprep.subr.bf16.mxu0 %v2212_v36 }
 0x51d   : > { %v990_v46 = vmul.f32 %v985_v28, %v978_v43 }
 0x51e   : > { %v1751_v47 = vpop.eup %1750  ;;  %1554 = vmatprep.mubr.msk.f32.mxu0 %vm458_vm0, %v1000_v54 }
 0x51f   : > { %1555 = vmatmul.mubr.msk.f32.gmra.mrb[6].mxu0 %vm458_vm0, %v1001_v45  ;;  %v1002_v60 = vadd.f32 %v997_v4, %v990_v46  ;;  %v980_v38 = vmul.f32 %v1751_v47, %v2162_v41  ;;  %v1192_v41 = vld [vmem:[%s2321_s6 + $0x30] sm:$0xff] }
 0x520   : > { %1654 = vmatpush3.bf16.msra.mxu0 %v2212_v36  ;;  %v1193_v36 = vld [vmem:[%s2321_s6 + $0x38] sm:$0xff] }
 0x521   : > { %1557 = vmatprep.mubr.msk.f32.mxu0 %vm458_vm0, %v1002_v60  ;;  %v992_v29 = vmul.f32 %v985_v28, %v980_v38  ;;  %v1655_v59 = vpack.c.bf16 %v1193_v36, %v1192_v41 }
 0x522   : > { %v1753_v51 = vpop.eup %1752 }
 0x523   : > { %1558 = vmatmul.mubr.msk.f32.gmra.mrb[8].mxu0 %vm458_vm0, %v1003_v27  ;;  %v1004_v52 = vadd.f32 %v997_v4, %v992_v29  ;;  %v981_v53 = vmul.f32 %v1753_v51, %v2168_v6  ;;  %1656 = vmatprep.subr.bf16.mxu0 %v1655_v59  ;;  %v1194_v6 = vld [vmem:[%s2321_s6 + $0x40] sm:$0xff] }
 0x524   : > { %1678 = vmatprep.subr.bf16.mxu1 %v1655_v59  ;;  %1658 = vmatpush3.bf16.msra.mxu0 %v1655_v59  ;;  %v1659_v24 = vpack.c.bf16 %v1195_v61, %v1194_v6 }
 0x525   : > { %1560 = vmatprep.mubr.msk.f32.mxu0 %vm458_vm0, %v1004_v52  ;;  %v993_v57 = vmul.f32 %v985_v28, %v981_v53  ;;  %1686 = vmatpush3.bf16.msra.mxu1 %v1655_v59  ;;  %v1201_v28 = vld [vmem:[%s2321_s6 + $0x78] sm:$0xff] }
 0x526   : > { %1660 = vmatprep.subr.bf16.mxu0 %v1659_v24  ;;  %1679 = vmatprep.subr.bf16.mxu1 %v1659_v24  ;;  %v1671_v63 = vpack.c.bf16 %v1201_v28, %v1200_v55 }
 0x527   : > { %v1005_v58 = vadd.f32 %v997_v4, %v993_v57 }
 0x528   : > { %1662 = vmatpush3.bf16.msra.mxu0 %v1659_v24 }
 0x529   : > { %1561 = vmatmul.mubr.msk.f32.gmra.mrb[10].mxu0 %vm458_vm0, %v1005_v58  ;;  %1687 = vmatpush3.bf16.msra.mxu1 %v1659_v24 }
 0x52a   : > { %1664 = vmatprep.subr.bf16.mxu0 %v1663_v39  ;;  %1680 = vmatprep.subr.bf16.mxu1 %v1663_v39 }
 0x52c   : > { %1666 = vmatpush3.bf16.msra.mxu0 %v1663_v39 }
 0x52d   : > { %1688 = vmatpush3.bf16.msra.mxu1 %v1663_v39  ;;  %1668 = vmatprep.subr.bf16.mxu0 %v1667_v44 }
 0x52e   : > { %1681 = vmatprep.subr.bf16.mxu1 %v1667_v44 }
 0x530   : > { %1670 = vmatpush3.bf16.msra.mxu0 %v1667_v44 }
 0x531   : > { %1689 = vmatpush3.bf16.msra.mxu1 %v1667_v44  ;;  %1672 = vmatprep.subr.bf16.mxu0 %v1671_v63 }
 0x532   : > { %1682 = vmatprep.subr.bf16.mxu1 %v1671_v63 }
 0x534   : > { %1674 = vmatpush3.bf16.msra.mxu0 %v1671_v63 }
 0x535   : > { %1690 = vmatpush3.bf16.msra.mxu1 %v1671_v63 }
 0x5e9   : > { %v1553_v32 = vpop.f32.mrb[4].mxu0 }
 0x5ea   : > { %v1113_v1 = vadd.f32 %v1553_v32, %v1427_v0  ;;  %v1107_v48 = vpop.f32.mrb[5].mxu0 }
 0x5eb   : > { %v1108_v2 = vadd.f32 %v1427_v0, %v1107_v48  ;;  %v1204_v48 = vsub.s32 2, %v2217_v56 }
 0x5ec   : > { %v1155_v4 = vmul.f32 0.70710677, %v1113_v1  ;;  %v1147_v43 = vmul.f32 0.5, %v1113_v1 }
 0x5ed   : > { %v1154_v7 = vmul.f32 0.70710677, %v1108_v2  ;;  %v1146_v33 = vmul.f32 0.5, %v1108_v2  ;;  %v1205_v2 = vrot.slane %v2223_v62, %v1204_v48 }
 0x5ee   : > { %1754 = verf.f32 %v1155_v4 }
 0x5ef   : > { %1756 = verf.f32 %v1154_v7 }
 0x5f2   : > { %v1556_v8 = vpop.f32.mrb[6].mxu0 }
 0x5f3   : > { %v1123_v9 = vadd.f32 %v1556_v8, %v1427_v0  ;;  %v1117_v10 = vpop.f32.mrb[7].mxu0 }
 0x5f4   : > { %v1118_v12 = vadd.f32 %v1427_v0, %v1117_v10 }
 0x5f5   : > { %v1157_v13 = vmul.f32 0.70710677, %v1123_v9  ;;  %v1149_v58 = vmul.f32 0.5, %v1123_v9 }
 0x5f6   : > { %v1156_v15 = vmul.f32 0.70710677, %v1118_v12  ;;  %v1559_v16 = vpop.f32.mrb[8].mxu0  ;;  %v1148_v53 = vmul.f32 0.5, %v1118_v12 }
 0x5f7   : > { %1758 = verf.f32 %v1157_v13  ;;  %v1133_v49 = vadd.f32 %v1559_v16, %v1427_v0  ;;  %v1127_v18 = vpop.f32.mrb[9].mxu0 }
 0x5f8   : > { %v1755_v19 = vpop.eup %1754  ;;  %1760 = verf.f32 %v1156_v15  ;;  %v1128_v20 = vadd.f32 %v1427_v0, %v1127_v18 }
 0x5f9   : > { %v1757_v50 = vpop.eup %1756  ;;  %v1171_v21 = vadd.f32 1.0, %v1755_v19  ;;  %v1159_v23 = vmul.f32 0.70710677, %v1133_v49  ;;  %v1151_v34 = vmul.f32 0.5, %v1133_v49 }
 0x5fa   : > { %v1170_v35 = vadd.f32 1.0, %v1757_v50  ;;  %v1158_v42 = vmul.f32 0.70710677, %v1128_v20  ;;  %v1150_v24 = vmul.f32 0.5, %v1128_v20 }
 0x5fb   : > { %1762 = verf.f32 %v1159_v23  ;;  %v1179_v46 = vmul.f32 %v1171_v21, %v1147_v43 }
 0x5fc   : > { %1764 = verf.f32 %v1158_v42  ;;  %v1562_v54 = vpop.f32.mrb[10].mxu0  ;;  %v1178_v45 = vmul.f32 %v1170_v35, %v1146_v33 }
 0x5fd   : > { %v1143_v22 = vadd.f32 %v1562_v54, %v1427_v0  ;;  %v1137_v47 = vpop.f32.mrb[11].mxu0 }
 0x5fe   : > { %v1138_v60 = vadd.f32 %v1427_v0, %v1137_v47  ;;  %1595 = vmatprep.mubr.f32.mxu0 %v1178_v45 }
 0x5ff   : > { %v1161_v38 = vmul.f32 0.70710677, %v1143_v22  ;;  %1596 = vmatmul.mubr.f32.vlgmr.msra.gmra.mrb[12].mxu0 %v1179_v46  ;;  %v1153_v0 = vmul.f32 0.5, %v1143_v22 }
 0x600   : > { %v1160_v27 = vmul.f32 0.70710677, %v1138_v60  ;;  %v1152_v28 = vmul.f32 0.5, %v1138_v60 }
 0x601   : > { %v1759_v29 = vpop.eup %1758  ;;  %1766 = verf.f32 %v1161_v38 }
 0x602   : > { %v1761_v51 = vpop.eup %1760  ;;  %v1173_v52 = vadd.f32 1.0, %v1759_v29  ;;  %1768 = verf.f32 %v1160_v27 }
 0x603   : > { %v1172_v57 = vadd.f32 1.0, %v1761_v51 }
 0x604   : > { %v1181_v6 = vmul.f32 %v1173_v52, %v1149_v58 }
 0x605   : > { %v1763_v41 = vpop.eup %1762  ;;  %v1180_v36 = vmul.f32 %v1172_v57, %v1148_v53 }
 0x606   : > { %v1765_v59 = vpop.eup %1764  ;;  %v1175_v61 = vadd.f32 1.0, %v1763_v41 }
 0x607   : > { %v1174_v25 = vadd.f32 1.0, %v1765_v59  ;;  %1598 = vmatprep.mubr.f32.mxu1 %v1180_v36 }
 0x608   : > { %1599 = vmatmul.mubr.f32.vlgmr.msra.gmra.mrb[8].mxu1 %v1181_v6  ;;  %v1183_v26 = vmul.f32 %v1175_v61, %v1151_v34 }
 0x609   : > { %v1182_v39 = vmul.f32 %v1174_v25, %v1150_v24 }
 0x60b   : > { %v1767_v40 = vpop.eup %1766  ;;  %1601 = vmatprep.mubr.f32.mxu1 %v1182_v39 }
 0x60c   : > { %v1769_v44 = vpop.eup %1768  ;;  %v1177_v55 = vadd.f32 1.0, %v1767_v40  ;;  %1602 = vmatmul.mubr.f32.gmra.mrb[10].mxu1 %v1183_v26 }
 0x60d   : > { %v1176_v63 = vadd.f32 1.0, %v1769_v44 }
 0x60e   : > { %v1185_v1 = vmul.f32 %v1177_v55, %v1153_v0 }
 0x60f   : > { %v1184_v32 = vmul.f32 %v1176_v63, %v1152_v28 }
 0x611   : > { %1604 = vmatprep.mubr.f32.mxu1 %v1184_v32 }
 0x612   : > { %1605 = vmatmul.mubr.f32.gmra.mrb[12].mxu1 %v1185_v1 }
 0x6d2   : > { %v1597_v4 = vpop.f32.mrb[12].mxu0 }
 0x6d3   : > { %v1278_v7 = vadd.f32 %v1597_v4, %v1205_v2  ;;  %v1272_v8 = vpop.f32.mrb[13].mxu0 }
 0x6d4   : > { %v1273_v9 = vadd.f32 %v1272_v8, %v1205_v2 }
 0x6d5   : > { %v1312_v10 = vadd.f32 %v1278_v7, %v2088_v3 }
 0x6d6   : > { %v1311_v12 = vadd.f32 %v1273_v9, %v2090_v5 }
 0x6d7   : > { %1320 = vst.msk [vmem:[%s425_s12 + $0x8] sm:$0xff] %vm458_vm0, %v1312_v10 }
 0x6d8   : > { %1319 = vst.msk [vmem:[%s425_s12] sm:$0xff] %vm458_vm0, %v1311_v12 }
 0x6db   : > { %v1600_v56 = vpop.f32.mrb[8].mxu1 }
 0x6dc   : > { %v1288_v13 = vadd.f32 %v1600_v56, %v1205_v2  ;;  %v1282_v62 = vpop.f32.mrb[9].mxu1 }
 0x6dd   : > { %v1283_v15 = vadd.f32 %v1282_v62, %v1205_v2 }
 0x6de   : > { %v1314_v16 = vadd.f32 %v1288_v13, %v2098_v11 }
 0x6df   : > { %v1313_v49 = vadd.f32 %v1283_v15, %v2101_v14  ;;  %v1603_v18 = vpop.f32.mrb[10].mxu1 }
 0x6e0   : > { %1322 = vst.msk [vmem:[%s425_s12 + $0x18] sm:$0xff] %vm458_vm0, %v1314_v16  ;;  %v1298_v19 = vadd.f32 %v1603_v18, %v1205_v2  ;;  %v1292_v20 = vpop.f32.mrb[11].mxu1 }
 0x6e1   : > { %1321 = vst.msk [vmem:[%s425_s12 + $0x10] sm:$0xff] %vm458_vm0, %v1313_v49  ;;  %v1293_v3 = vadd.f32 %v1292_v20, %v1205_v2 }
 0x6e2   : > { %v1316_v5 = vadd.f32 %v1298_v19, %v2105_v17 }
 0x6e3   : > { %v1315_v50 = vadd.f32 %v1293_v3, %v2113_v30 }
 0x6e4   : > { %1324 = vst.msk [vmem:[%s425_s12 + $0x28] sm:$0xff] %vm458_vm0, %v1316_v5 }
 0x6e5   : > { %1323 = vst.msk [vmem:[%s425_s12 + $0x20] sm:$0xff] %vm458_vm0, %v1315_v50  ;;  %v1606_v21 = vpop.f32.mrb[12].mxu1 }
 0x6e6   : > { %v1308_v11 = vadd.f32 %v1606_v21, %v1205_v2  ;;  %v1302_v23 = vpop.f32.mrb[13].mxu1 }
 0x6e7   : > { %v1303_v14 = vadd.f32 %v1302_v23, %v1205_v2 }
 0x6e8   : > { %v1318_v33 = vadd.f32 %v1308_v11, %v2122_v37 }
 0x6e9   : > { %v1317_v35 = vadd.f32 %v1303_v14, %v2115_v31 }
 0x6ea   : > { %1326 = vst.msk [vmem:[%s425_s12 + $0x38] sm:$0xff] %vm458_vm0, %v1318_v33 }
 0x6eb   : > { %1325 = vst.msk [vmem:[%s425_s12 + $0x30] sm:$0xff] %vm458_vm0, %v1317_v35 }
 0x6ec PF: > { %p14_p9 = scmp.ge.s32.totalorder %s1851_s28, 4   ;;  %s2323_s24 = smov %s1788_s25 }
 0x6ed   : > { %s2324_s25 = smov %s1860_s8  ;;  %s2325_s26 = smov %s1851_s28 }
 0x6ee   :  { %16 = sbr.rel (!%p14_p9) target bundleno = 2 (0x2), region = 124 }

</bundles_post_ra>
